<compile_context>
chip_gen: v7x
topology: tpu7x:2x2x1
jax: 0.10.0
libtpu: 0.0.40
codegen_flags: <defaults>
</compile_context>

<pallas_src>
import functools

import jax
import jax.numpy as jnp
from jax import lax
from jax.experimental import pallas as pl
from jax.experimental.pallas import tpu as pltpu

PAD = 0          # Constants.PAD
LANE = 128
SUBLANE = 8


def _round_up(x, m):
    return (x + m - 1) // m * m


def _pad_gates(w, rows_to, h_from, h_to):
    """Zero-pad a (rows, 4*h_from) LSTM gate matrix/bias to (rows_to, 4*h_to),
    padding each of the 4 (i,f,g,o) gate blocks independently so the gate
    order is preserved and padded lanes stay exactly zero."""
    rows = w.shape[0]
    w4 = w.reshape(rows, 4, h_from)
    w4 = jnp.pad(w4, ((0, rows_to - rows), (0, 0), (0, h_to - h_from)))
    return w4.reshape(rows_to, 4 * h_to)


def _sigmoid_via_tanh(x):
    # sigmoid(x) == 0.5 * (tanh(0.5 * x) + 1); one EUP op instead of exp+recip.
    return 0.5 * (jnp.tanh(0.5 * x) + 1.0)


def _lstm_gates(gates, c, Hp):
    """gates: (Bp, 4Hp) f32 pre-activations; returns (h_new, c_new)."""
    i = _sigmoid_via_tanh(gates[:, 0 * Hp:1 * Hp])
    f = _sigmoid_via_tanh(gates[:, 1 * Hp:2 * Hp])
    g = jnp.tanh(gates[:, 2 * Hp:3 * Hp])
    o = _sigmoid_via_tanh(gates[:, 3 * Hp:4 * Hp])
    c_new = f * c + i * g
    h_new = o * jnp.tanh(c_new)
    return h_new, c_new


def rnn2one_recurrence_kernel(lens_ref, gxf_ref, gxb_ref, whhf_ref, whhb_ref,
                              hid_ref, c_f, c_b, *, unroll):
    ct = pl.program_id(0)
    nchunks = pl.num_programs(0)
    Tc = gxf_ref.shape[0]
    Hp = whhf_ref.shape[0]
    Bp = lens_ref.shape[0]

    @pl.when(ct == 0)
    def _init():
        hid_ref[...] = jnp.zeros_like(hid_ref)   # running h_f / h_b live here
        c_f[...] = jnp.zeros_like(c_f)
        c_b[...] = jnp.zeros_like(c_b)

    # Hoisted once per grid step: full-width lengths vreg reused by every
    # select in the chunk (JAX does not CSE broadcast_in_dim).
    lens_full = jnp.broadcast_to(lens_ref[...], (Bp, Hp))      # (Bp, Hp) int32

    def step(j, carry):
        hf, cf, hb, cb = carry

        # global time indices handled at inner step j of this chunk
        tf = ct * Tc + j                      # forward direction
        tb = nchunks * Tc - 1 - tf            # backward direction (reversed)

        # ---- forward direction -------------------------------------------
        gf = gxf_ref[j].astype(jnp.float32) + jnp.dot(
            hf, whhf_ref[...], preferred_element_type=jnp.float32)
        hf_new, cf_new = _lstm_gates(gf, cf, Hp)
        vf = lens_full > tf                   # freeze state on padded steps
        hf = jnp.where(vf, hf_new, hf)
        cf = jnp.where(vf, cf_new, cf)

        # ---- backward direction (independent dep chain -> ILP) ------------
        gb = gxb_ref[Tc - 1 - j].astype(jnp.float32) + jnp.dot(
            hb, whhb_ref[...], preferred_element_type=jnp.float32)
        hb_new, cb_new = _lstm_gates(gb, cb, Hp)
        vb = lens_full > tb
        hb = jnp.where(vb, hb_new, hb)
        cb = jnp.where(vb, cb_new, cb)

        return hf, cf, hb, cb

    carry0 = (hid_ref[0], c_f[...], hid_ref[1], c_b[...])
    hf, cf, hb, cb = lax.fori_loop(0, Tc, step, carry0, unroll=unroll)

    hid_ref[0] = hf
    c_f[...] = cf
    hid_ref[1] = hb
    c_b[...] = cb


@functools.partial(jax.jit, static_argnames=("time_chunk", "unroll"))
def rnn2one_forward(data, lengths, params, *, time_chunk=16, unroll=4):
    """data: (B, T) int32 token ids, lengths: (B,) int32 -> (B, class_size)."""
    B, T = data.shape
    emb = params["emb"]                        # (V, E), PAD row is zero
    E = emb.shape[1]
    H = params["whh_f"].shape[0]

    # Bp stays at a sublane multiple for this tiny batch; grow toward the MXU
    # width (128 on v5e, 256 on v6e/v7x) when the real batch allows.
    Bp = _round_up(max(B, SUBLANE), SUBLANE)
    Ep = _round_up(E, LANE)
    Hp = _round_up(H, LANE)

    Tc = max(1, min(int(time_chunk), T))       # timesteps per grid step
    T_pad = _round_up(T, Tc)
    nchunks = T_pad // Tc
    unroll_eff = max(1, min(int(unroll), Tc))

    # ---------------- plain-JAX glue: pad + gather + hoisted input GEMM -----
    data_p = jnp.pad(data, ((0, Bp - B), (0, T_pad - T)), constant_values=PAD)
    lens_p = jnp.pad(lengths.astype(jnp.int32), (0, Bp - B)).reshape(Bp, 1)

    emb_p = jnp.pad(emb, ((0, 0), (0, Ep - E)))
    # time-major gather so the input-projection GEMM writes (T, Bp, 4Hp)
    # directly (no XLA transpose of the largest intermediate).
    x = emb_p[data_p.T]                        # (T_pad, Bp, Ep) f32

    wih_f = _pad_gates(params["wih_f"], Ep, H, Hp)
    wih_b = _pad_gates(params["wih_b"], Ep, H, Hp)
    b_f = _pad_gates(params["b_f"], 1, H, Hp)
    b_b = _pad_gates(params["b_b"], 1, H, Hp)
    whh_f = _pad_gates(params["whh_f"], Hp, H, Hp)
    whh_b = _pad_gates(params["whh_b"], Hp, H, Hp)

    # Input projection for all timesteps as one dense f32 GEMM per direction,
    # bias folded in; stored bf16 to halve the dominant HBM stream into the
    # recurrence kernel (added to the f32 accumulator in-kernel).
    gx_f = (jnp.einsum("tbe,eg->tbg", x, wih_f,
                       preferred_element_type=jnp.float32) + b_f
            ).astype(jnp.bfloat16)             # (T_pad, Bp, 4Hp)
    gx_b = (jnp.einsum("tbe,eg->tbg", x, wih_b,
                       preferred_element_type=jnp.float32) + b_b
            ).astype(jnp.bfloat16)

    # ---------------- Pallas recurrence kernel ------------------------------
    kernel = functools.partial(rnn2one_recurrence_kernel, unroll=unroll_eff)
    hid = pl.pallas_call(
        kernel,
        out_shape=jax.ShapeDtypeStruct((2, Bp, Hp), jnp.float32),
        grid=(nchunks,),
        in_specs=[
            pl.BlockSpec((Bp, 1), lambda ct: (0, 0)),                    # lengths
            pl.BlockSpec((Tc, Bp, 4 * Hp), lambda ct: (ct, 0, 0)),       # fwd gates
            pl.BlockSpec((Tc, Bp, 4 * Hp),
                         lambda ct: (nchunks - 1 - ct, 0, 0)),           # bwd gates
            pl.BlockSpec((Hp, 4 * Hp), lambda ct: (0, 0)),               # W_hh fwd
            pl.BlockSpec((Hp, 4 * Hp), lambda ct: (0, 0)),               # W_hh bwd
        ],
        out_specs=pl.BlockSpec((2, Bp, Hp), lambda ct: (0, 0, 0)),
        scratch_shapes=[pltpu.VMEM((Bp, Hp), jnp.float32)] * 2,          # c_f, c_b
        compiler_params=pltpu.CompilerParams(
            dimension_semantics=("arbitrary",),
            vmem_limit_bytes=32 * 1024 * 1024),
    )(lens_p, gx_f, gx_b, whh_f, whh_b)

    # ---------------- tiny classifier in XLA (dropout = identity, eval) -----
    h_cat = jnp.concatenate([hid[0, :B, :H], hid[1, :B, :H]], axis=-1)   # (B, 2H)
    logits = h_cat @ params["lin_w"] + params["lin_b"]
    return jax.nn.sigmoid(logits)


def rnn2one_reference(data, lengths, params):
    """Pure-JAX f32 reference with identical packed-sequence semantics."""
    B, T = data.shape
    H = params["whh_f"].shape[0]
    x = params["emb"][data]                    # (B, T, E)
    lens = lengths.astype(jnp.int32)

    def run(wih, whh, b, time_order):
        def step(carry, t):
            h, c = carry
            xt = jnp.take(x, t, axis=1)                    # (B, E)
            gates = xt @ wih + b + h @ whh                 # (B, 4H)
            i = jax.nn.sigmoid(gates[:, 0 * H:1 * H])
            f = jax.nn.sigmoid(gates[:, 1 * H:2 * H])
            g = jnp.tanh(gates[:, 2 * H:3 * H])
            o = jax.nn.sigmoid(gates[:, 3 * H:4 * H])
            c_new = f * c + i * g
            h_new = o * jnp.tanh(c_new)
            valid = (lens > t)[:, None]
            return (jnp.where(valid, h_new, h), jnp.where(valid, c_new, c)), None

        init = (jnp.zeros((B, H), jnp.float32), jnp.zeros((B, H), jnp.float32))
        (h, _), _ = lax.scan(step, init, time_order)
        return h

    h_f = run(params["wih_f"], params["whh_f"], params["b_f"], jnp.arange(T))
    h_b = run(params["wih_b"], params["whh_b"], params["b_b"],
              jnp.arange(T - 1, -1, -1))
    h_cat = jnp.concatenate([h_f, h_b], axis=-1)
    return jax.nn.sigmoid(h_cat @ params["lin_w"] + params["lin_b"])


def init_params(key, vocab_size, class_size, emb_dim, hid_dim):
    ks = jax.random.split(key, 12)

    def u(k, shape, bound):
        return jax.random.uniform(k, shape, jnp.float32, -bound, bound)

    # Embedding (padding_idx row zeroed, as nn.Embedding with padding_idx does)
    emb = jax.random.normal(ks[0], (vocab_size, emb_dim), jnp.float32)
    emb = emb.at[PAD].set(0.0)

    # LSTM weights, PyTorch default init U(-1/sqrt(H), 1/sqrt(H)); b_ih+b_hh fused
    bd = 1.0 / float(hid_dim) ** 0.5
    wih_f = u(ks[1], (emb_dim, 4 * hid_dim), bd)
    whh_f = u(ks[2], (hid_dim, 4 * hid_dim), bd)
    b_f = u(ks[3], (1, 4 * hid_dim), bd) + u(ks[4], (1, 4 * hid_dim), bd)
    wih_b = u(ks[5], (emb_dim, 4 * hid_dim), bd)
    whh_b = u(ks[6], (hid_dim, 4 * hid_dim), bd)
    b_b = u(ks[7], (1, 4 * hid_dim), bd) + u(ks[8], (1, 4 * hid_dim), bd)

    # Classifier: weight U(-0.1, 0.1), bias 0 (matches init_params in the module)
    lin_w = u(ks[9], (2 * hid_dim, class_size), 0.1)
    lin_b = jnp.zeros((1, class_size), jnp.float32)

    return dict(emb=emb,
                wih_f=wih_f, whh_f=whh_f, b_f=b_f,
                wih_b=wih_b, whh_b=whh_b, b_b=b_b,
                lin_w=lin_w, lin_b=lin_b)


if __name__ == "__main__":
    vocab_size, class_size, emb_dim, hid_dim = 50, 4, 32, 32
    B, T = 2, 8

    key = jax.random.PRNGKey(0)
    k_params, k_data = jax.random.split(key)
    params = init_params(k_params, vocab_size, class_size, emb_dim, hid_dim)

    lengths = jnp.array([8, 5], dtype=jnp.int32)
    data = jax.random.randint(k_data, (B, T), 1, vocab_size, dtype=jnp.int32)
    valid = jnp.arange(T)[None, :] < lengths[:, None]
    data = jnp.where(valid, data, PAD)

    # time_chunk=4 exercises the chunked grid (2 chunks) and the reversed
    # backward chunk indexing.
    scores = jax.block_until_ready(
        rnn2one_forward(data, lengths, params, time_chunk=4, unroll=4))
    assert scores.shape == (B, class_size)
    assert bool(jnp.all(jnp.isfinite(scores)))
    assert bool(jnp.all((scores >= 0.0) & (scores <= 1.0)))

    ref = rnn2one_reference(data, lengths, params)
    assert bool(jnp.allclose(scores, ref, atol=2e-2, rtol=0.0)), (scores, ref)
    print("KERNEL_OK")
</pallas_src>

<mosaic_0001>
module attributes {stable_mosaic.version = 11 : i64} {
  func.func @rnn2one_recurrence_kernel(%arg0: i32, %arg1: memref<8x1xi32, #tpu.memory_space<vmem>>, %arg2: memref<4x8x512xbf16, #tpu.memory_space<vmem>>, %arg3: memref<4x8x512xbf16, #tpu.memory_space<vmem>>, %arg4: memref<128x512xf32, #tpu.memory_space<vmem>>, %arg5: memref<128x512xf32, #tpu.memory_space<vmem>>, %arg6: memref<2x8x128xf32, #tpu.memory_space<vmem>>, %arg7: memref<8x128xf32, #tpu.memory_space<vmem>>, %arg8: memref<8x128xf32, #tpu.memory_space<vmem>>) attributes {dimension_semantics = [#tpu.dimension_semantics<arbitrary>], iteration_bounds = array<i64: 2>, scalar_prefetch = 0 : i64, scratch_operands = 2 : i64, tpu.core_type = #tpu.core_type<tc>, window_params = [{pipeline_mode = #tpu.pipeline_mode<synchronous>, transform_indices = @transform_0, window_bounds = array<i64: 8, 1>}, {transform_indices = @transform_1, window_bounds = array<i64: 4, 8, 512>}, {transform_indices = @transform_2, window_bounds = array<i64: 4, 8, 512>}, {pipeline_mode = #tpu.pipeline_mode<synchronous>, transform_indices = @transform_3, window_bounds = array<i64: 128, 512>}, {pipeline_mode = #tpu.pipeline_mode<synchronous>, transform_indices = @transform_4, window_bounds = array<i64: 128, 512>}, {pipeline_mode = #tpu.pipeline_mode<synchronous>, transform_indices = @transform_5, window_bounds = array<i64: 2, 8, 128>}]} {
    %c0_i32 = arith.constant 0 : i32
    %0 = arith.cmpi eq, %arg0, %c0_i32 : i32
    %1 = arith.extui %0 : i1 to i32
    %c0_i32_0 = arith.constant 0 : i32
    %2 = arith.cmpi ne, %1, %c0_i32_0 : i32
    scf.if %2 {
      %cst_144 = arith.constant 0.000000e+00 : f32
      %372 = vector.broadcast %cst_144 : f32 to vector<2x8x128xf32>
      %c0_145 = arith.constant 0 : index
      %c0_146 = arith.constant 0 : index
      %c0_147 = arith.constant 0 : index
      %373 = vector.load %arg6[%c0_145, %c0_146, %c0_147] : memref<2x8x128xf32, #tpu.memory_space<vmem>>, vector<2x8x128xf32>
      tpu.vector_store %arg6[%c0_145, %c0_146, %c0_147], %372 {strides = array<i32>} : memref<2x8x128xf32, #tpu.memory_space<vmem>>, vector<2x8x128xf32>,
      %cst_148 = arith.constant 0.000000e+00 : f32
      %374 = vector.broadcast %cst_148 : f32 to vector<8x128xf32>
      %c0_149 = arith.constant 0 : index
      %c0_150 = arith.constant 0 : index
      %375 = vector.load %arg7[%c0_149, %c0_150] : memref<8x128xf32, #tpu.memory_space<vmem>>, vector<8x128xf32>
      tpu.vector_store %arg7[%c0_149, %c0_150], %374 {strides = array<i32>} : memref<8x128xf32, #tpu.memory_space<vmem>>, vector<8x128xf32>,
      %cst_151 = arith.constant 0.000000e+00 : f32
      %376 = vector.broadcast %cst_151 : f32 to vector<8x128xf32>
      %c0_152 = arith.constant 0 : index
      %c0_153 = arith.constant 0 : index
      %377 = vector.load %arg8[%c0_152, %c0_153] : memref<8x128xf32, #tpu.memory_space<vmem>>, vector<8x128xf32>
      tpu.vector_store %arg8[%c0_152, %c0_153], %376 {strides = array<i32>} : memref<8x128xf32, #tpu.memory_space<vmem>>, vector<8x128xf32>,
    } else {
    }
    %c0 = arith.constant 0 : index
    %c0_1 = arith.constant 0 : index
    %3 = vector.load %arg1[%c0, %c0_1] : memref<8x1xi32, #tpu.memory_space<vmem>>, vector<8x1xi32>
    %4 = vector.shape_cast %3 : vector<8x1xi32> to vector<8x1xi32>
    %5 = vector.broadcast %4 : vector<8x1xi32> to vector<8x128xi32>
    %c0_2 = arith.constant 0 : index
    %c0_3 = arith.constant 0 : index
    %c0_4 = arith.constant 0 : index
    %6 = vector.load %arg6[%c0_2, %c0_3, %c0_4] : memref<2x8x128xf32, #tpu.memory_space<vmem>>, vector<1x8x128xf32>
    %7 = vector.shape_cast %6 : vector<1x8x128xf32> to vector<8x128xf32>
    %c0_5 = arith.constant 0 : index
    %c0_6 = arith.constant 0 : index
    %8 = vector.load %arg7[%c0_5, %c0_6] : memref<8x128xf32, #tpu.memory_space<vmem>>, vector<8x128xf32>
    %c1 = arith.constant 1 : index
    %c0_7 = arith.constant 0 : index
    %c0_8 = arith.constant 0 : index
    %9 = vector.load %arg6[%c1, %c0_7, %c0_8] : memref<2x8x128xf32, #tpu.memory_space<vmem>>, vector<1x8x128xf32>
    %10 = vector.shape_cast %9 : vector<1x8x128xf32> to vector<8x128xf32>
    %c0_9 = arith.constant 0 : index
    %c0_10 = arith.constant 0 : index
    %11 = vector.load %arg8[%c0_9, %c0_10] : memref<8x128xf32, #tpu.memory_space<vmem>>, vector<8x128xf32>
    %c0_i32_11 = arith.constant 0 : i32
    %c4_i32 = arith.constant 4 : i32
    %12 = arith.muli %arg0, %c4_i32 : i32
    %13 = arith.addi %12, %c0_i32_11 : i32
    %c7_i32 = arith.constant 7 : i32
    %14 = arith.subi %c7_i32, %13 : i32
    %15 = arith.index_cast %c0_i32_11 : i32 to index
    %c0_12 = arith.constant 0 : index
    %c0_13 = arith.constant 0 : index
    %16 = vector.load %arg2[%15, %c0_12, %c0_13] : memref<4x8x512xbf16, #tpu.memory_space<vmem>>, vector<1x8x512xbf16>
    %17 = vector.shape_cast %16 : vector<1x8x512xbf16> to vector<8x512xbf16>
    %18 = arith.extf %17 : vector<8x512xbf16> to vector<8x512xf32>
    %c0_14 = arith.constant 0 : index
    %c0_15 = arith.constant 0 : index
    %19 = vector.load %arg4[%c0_14, %c0_15] : memref<128x512xf32, #tpu.memory_space<vmem>>, vector<128x512xf32>
    %cst = arith.constant dense<0.000000e+00> : vector<8x512xf32>
    %20 = tpu.matmul %7, %19, %cst {dimension_numbers = #tpu.dot_dimension_numbers<[1], [0], [0], [1], [0, 0, 1, 1], [], []>} : vector<8x128xf32>, vector<128x512xf32>, vector<8x512xf32> -> vector<8x512xf32>
    %21 = arith.addf %18, %20 : vector<8x512xf32>
    %22 = vector.extract_strided_slice %21 {offsets = [0, 0], sizes = [8, 128], strides = [1, 1]} : vector<8x512xf32> to vector<8x128xf32>
    %cst_16 = arith.constant 5.000000e-01 : f32
    %23 = vector.broadcast %cst_16 : f32 to vector<8x128xf32>
    %24 = arith.mulf %23, %22 : vector<8x128xf32>
    %25 = math.tanh %24 : vector<8x128xf32>
    %cst_17 = arith.constant 1.000000e+00 : f32
    %26 = vector.broadcast %cst_17 : f32 to vector<8x128xf32>
    %27 = arith.addf %25, %26 : vector<8x128xf32>
    %cst_18 = arith.constant 5.000000e-01 : f32
    %28 = vector.broadcast %cst_18 : f32 to vector<8x128xf32>
    %29 = arith.mulf %28, %27 : vector<8x128xf32>
    %30 = vector.extract_strided_slice %21 {offsets = [0, 128], sizes = [8, 128], strides = [1, 1]} : vector<8x512xf32> to vector<8x128xf32>
    %cst_19 = arith.constant 5.000000e-01 : f32
    %31 = vector.broadcast %cst_19 : f32 to vector<8x128xf32>
    %32 = arith.mulf %31, %30 : vector<8x128xf32>
    %33 = math.tanh %32 : vector<8x128xf32>
    %cst_20 = arith.constant 1.000000e+00 : f32
    %34 = vector.broadcast %cst_20 : f32 to vector<8x128xf32>
    %35 = arith.addf %33, %34 : vector<8x128xf32>
    %cst_21 = arith.constant 5.000000e-01 : f32
    %36 = vector.broadcast %cst_21 : f32 to vector<8x128xf32>
    %37 = arith.mulf %36, %35 : vector<8x128xf32>
    %38 = vector.extract_strided_slice %21 {offsets = [0, 256], sizes = [8, 128], strides = [1, 1]} : vector<8x512xf32> to vector<8x128xf32>
    %39 = math.tanh %38 : vector<8x128xf32>
    %40 = vector.extract_strided_slice %21 {offsets = [0, 384], sizes = [8, 128], strides = [1, 1]} : vector<8x512xf32> to vector<8x128xf32>
    %cst_22 = arith.constant 5.000000e-01 : f32
    %41 = vector.broadcast %cst_22 : f32 to vector<8x128xf32>
    %42 = arith.mulf %41, %40 : vector<8x128xf32>
    %43 = math.tanh %42 : vector<8x128xf32>
    %cst_23 = arith.constant 1.000000e+00 : f32
    %44 = vector.broadcast %cst_23 : f32 to vector<8x128xf32>
    %45 = arith.addf %43, %44 : vector<8x128xf32>
    %cst_24 = arith.constant 5.000000e-01 : f32
    %46 = vector.broadcast %cst_24 : f32 to vector<8x128xf32>
    %47 = arith.mulf %46, %45 : vector<8x128xf32>
    %48 = arith.mulf %37, %8 : vector<8x128xf32>
    %49 = arith.mulf %29, %39 : vector<8x128xf32>
    %50 = arith.addf %48, %49 : vector<8x128xf32>
    %51 = math.tanh %50 : vector<8x128xf32>
    %52 = arith.mulf %47, %51 : vector<8x128xf32>
    %53 = vector.broadcast %13 : i32 to vector<8x128xi32>
    %54 = arith.cmpi sgt, %5, %53 : vector<8x128xi32>
    %55 = arith.select %54, %52, %7 : vector<8x128xi1>, vector<8x128xf32>
    %56 = arith.select %54, %50, %8 : vector<8x128xi1>, vector<8x128xf32>
    %c3_i32 = arith.constant 3 : i32
    %57 = arith.subi %c3_i32, %c0_i32_11 : i32
    %58 = arith.index_cast %57 : i32 to index
    %c0_25 = arith.constant 0 : index
    %c0_26 = arith.constant 0 : index
    %59 = vector.load %arg3[%58, %c0_25, %c0_26] : memref<4x8x512xbf16, #tpu.memory_space<vmem>>, vector<1x8x512xbf16>
    %60 = vector.shape_cast %59 : vector<1x8x512xbf16> to vector<8x512xbf16>
    %61 = arith.extf %60 : vector<8x512xbf16> to vector<8x512xf32>
    %c0_27 = arith.constant 0 : index
    %c0_28 = arith.constant 0 : index
    %62 = vector.load %arg5[%c0_27, %c0_28] : memref<128x512xf32, #tpu.memory_space<vmem>>, vector<128x512xf32>
    %cst_29 = arith.constant dense<0.000000e+00> : vector<8x512xf32>
    %63 = tpu.matmul %10, %62, %cst_29 {dimension_numbers = #tpu.dot_dimension_numbers<[1], [0], [0], [1], [0, 0, 1, 1], [], []>} : vector<8x128xf32>, vector<128x512xf32>, vector<8x512xf32> -> vector<8x512xf32>
    %64 = arith.addf %61, %63 : vector<8x512xf32>
    %65 = vector.extract_strided_slice %64 {offsets = [0, 0], sizes = [8, 128], strides = [1, 1]} : vector<8x512xf32> to vector<8x128xf32>
    %cst_30 = arith.constant 5.000000e-01 : f32
    %66 = vector.broadcast %cst_30 : f32 to vector<8x128xf32>
    %67 = arith.mulf %66, %65 : vector<8x128xf32>
    %68 = math.tanh %67 : vector<8x128xf32>
    %cst_31 = arith.constant 1.000000e+00 : f32
    %69 = vector.broadcast %cst_31 : f32 to vector<8x128xf32>
    %70 = arith.addf %68, %69 : vector<8x128xf32>
    %cst_32 = arith.constant 5.000000e-01 : f32
    %71 = vector.broadcast %cst_32 : f32 to vector<8x128xf32>
    %72 = arith.mulf %71, %70 : vector<8x128xf32>
    %73 = vector.extract_strided_slice %64 {offsets = [0, 128], sizes = [8, 128], strides = [1, 1]} : vector<8x512xf32> to vector<8x128xf32>
    %cst_33 = arith.constant 5.000000e-01 : f32
    %74 = vector.broadcast %cst_33 : f32 to vector<8x128xf32>
    %75 = arith.mulf %74, %73 : vector<8x128xf32>
    %76 = math.tanh %75 : vector<8x128xf32>
    %cst_34 = arith.constant 1.000000e+00 : f32
    %77 = vector.broadcast %cst_34 : f32 to vector<8x128xf32>
    %78 = arith.addf %76, %77 : vector<8x128xf32>
    %cst_35 = arith.constant 5.000000e-01 : f32
    %79 = vector.broadcast %cst_35 : f32 to vector<8x128xf32>
    %80 = arith.mulf %79, %78 : vector<8x128xf32>
    %81 = vector.extract_strided_slice %64 {offsets = [0, 256], sizes = [8, 128], strides = [1, 1]} : vector<8x512xf32> to vector<8x128xf32>
    %82 = math.tanh %81 : vector<8x128xf32>
    %83 = vector.extract_strided_slice %64 {offsets = [0, 384], sizes = [8, 128], strides = [1, 1]} : vector<8x512xf32> to vector<8x128xf32>
    %cst_36 = arith.constant 5.000000e-01 : f32
    %84 = vector.broadcast %cst_36 : f32 to vector<8x128xf32>
    %85 = arith.mulf %84, %83 : vector<8x128xf32>
    %86 = math.tanh %85 : vector<8x128xf32>
    %cst_37 = arith.constant 1.000000e+00 : f32
    %87 = vector.broadcast %cst_37 : f32 to vector<8x128xf32>
    %88 = arith.addf %86, %87 : vector<8x128xf32>
    %cst_38 = arith.constant 5.000000e-01 : f32
    %89 = vector.broadcast %cst_38 : f32 to vector<8x128xf32>
    %90 = arith.mulf %89, %88 : vector<8x128xf32>
    %91 = arith.mulf %80, %11 : vector<8x128xf32>
    %92 = arith.mulf %72, %82 : vector<8x128xf32>
    %93 = arith.addf %91, %92 : vector<8x128xf32>
    %94 = math.tanh %93 : vector<8x128xf32>
    %95 = arith.mulf %90, %94 : vector<8x128xf32>
    %96 = vector.broadcast %14 : i32 to vector<8x128xi32>
    %97 = arith.cmpi sgt, %5, %96 : vector<8x128xi32>
    %98 = arith.select %97, %95, %10 : vector<8x128xi1>, vector<8x128xf32>
    %99 = arith.select %97, %93, %11 : vector<8x128xi1>, vector<8x128xf32>
    %c1_i32 = arith.constant 1 : i32
    %c4_i32_39 = arith.constant 4 : i32
    %100 = arith.muli %arg0, %c4_i32_39 : i32
    %101 = arith.addi %100, %c1_i32 : i32
    %c7_i32_40 = arith.constant 7 : i32
    %102 = arith.subi %c7_i32_40, %101 : i32
    %103 = arith.index_cast %c1_i32 : i32 to index
    %c0_41 = arith.constant 0 : index
    %c0_42 = arith.constant 0 : index
    %104 = vector.load %arg2[%103, %c0_41, %c0_42] : memref<4x8x512xbf16, #tpu.memory_space<vmem>>, vector<1x8x512xbf16>
    %105 = vector.shape_cast %104 : vector<1x8x512xbf16> to vector<8x512xbf16>
    %106 = arith.extf %105 : vector<8x512xbf16> to vector<8x512xf32>
    %c0_43 = arith.constant 0 : index
    %c0_44 = arith.constant 0 : index
    %107 = vector.load %arg4[%c0_43, %c0_44] : memref<128x512xf32, #tpu.memory_space<vmem>>, vector<128x512xf32>
    %cst_45 = arith.constant dense<0.000000e+00> : vector<8x512xf32>
    %108 = tpu.matmul %55, %107, %cst_45 {dimension_numbers = #tpu.dot_dimension_numbers<[1], [0], [0], [1], [0, 0, 1, 1], [], []>} : vector<8x128xf32>, vector<128x512xf32>, vector<8x512xf32> -> vector<8x512xf32>
    %109 = arith.addf %106, %108 : vector<8x512xf32>
    %110 = vector.extract_strided_slice %109 {offsets = [0, 0], sizes = [8, 128], strides = [1, 1]} : vector<8x512xf32> to vector<8x128xf32>
    %cst_46 = arith.constant 5.000000e-01 : f32
    %111 = vector.broadcast %cst_46 : f32 to vector<8x128xf32>
    %112 = arith.mulf %111, %110 : vector<8x128xf32>
    %113 = math.tanh %112 : vector<8x128xf32>
    %cst_47 = arith.constant 1.000000e+00 : f32
    %114 = vector.broadcast %cst_47 : f32 to vector<8x128xf32>
    %115 = arith.addf %113, %114 : vector<8x128xf32>
    %cst_48 = arith.constant 5.000000e-01 : f32
    %116 = vector.broadcast %cst_48 : f32 to vector<8x128xf32>
    %117 = arith.mulf %116, %115 : vector<8x128xf32>
    %118 = vector.extract_strided_slice %109 {offsets = [0, 128], sizes = [8, 128], strides = [1, 1]} : vector<8x512xf32> to vector<8x128xf32>
    %cst_49 = arith.constant 5.000000e-01 : f32
    %119 = vector.broadcast %cst_49 : f32 to vector<8x128xf32>
    %120 = arith.mulf %119, %118 : vector<8x128xf32>
    %121 = math.tanh %120 : vector<8x128xf32>
    %cst_50 = arith.constant 1.000000e+00 : f32
    %122 = vector.broadcast %cst_50 : f32 to vector<8x128xf32>
    %123 = arith.addf %121, %122 : vector<8x128xf32>
    %cst_51 = arith.constant 5.000000e-01 : f32
    %124 = vector.broadcast %cst_51 : f32 to vector<8x128xf32>
    %125 = arith.mulf %124, %123 : vector<8x128xf32>
    %126 = vector.extract_strided_slice %109 {offsets = [0, 256], sizes = [8, 128], strides = [1, 1]} : vector<8x512xf32> to vector<8x128xf32>
    %127 = math.tanh %126 : vector<8x128xf32>
    %128 = vector.extract_strided_slice %109 {offsets = [0, 384], sizes = [8, 128], strides = [1, 1]} : vector<8x512xf32> to vector<8x128xf32>
    %cst_52 = arith.constant 5.000000e-01 : f32
    %129 = vector.broadcast %cst_52 : f32 to vector<8x128xf32>
    %130 = arith.mulf %129, %128 : vector<8x128xf32>
    %131 = math.tanh %130 : vector<8x128xf32>
    %cst_53 = arith.constant 1.000000e+00 : f32
    %132 = vector.broadcast %cst_53 : f32 to vector<8x128xf32>
    %133 = arith.addf %131, %132 : vector<8x128xf32>
    %cst_54 = arith.constant 5.000000e-01 : f32
    %134 = vector.broadcast %cst_54 : f32 to vector<8x128xf32>
    %135 = arith.mulf %134, %133 : vector<8x128xf32>
    %136 = arith.mulf %125, %56 : vector<8x128xf32>
    %137 = arith.mulf %117, %127 : vector<8x128xf32>
    %138 = arith.addf %136, %137 : vector<8x128xf32>
    %139 = math.tanh %138 : vector<8x128xf32>
    %140 = arith.mulf %135, %139 : vector<8x128xf32>
    %141 = vector.broadcast %101 : i32 to vector<8x128xi32>
    %142 = arith.cmpi sgt, %5, %141 : vector<8x128xi32>
    %143 = arith.select %142, %140, %55 : vector<8x128xi1>, vector<8x128xf32>
    %144 = arith.select %142, %138, %56 : vector<8x128xi1>, vector<8x128xf32>
    %c3_i32_55 = arith.constant 3 : i32
    %145 = arith.subi %c3_i32_55, %c1_i32 : i32
    %146 = arith.index_cast %145 : i32 to index
    %c0_56 = arith.constant 0 : index
    %c0_57 = arith.constant 0 : index
    %147 = vector.load %arg3[%146, %c0_56, %c0_57] : memref<4x8x512xbf16, #tpu.memory_space<vmem>>, vector<1x8x512xbf16>
    %148 = vector.shape_cast %147 : vector<1x8x512xbf16> to vector<8x512xbf16>
    %149 = arith.extf %148 : vector<8x512xbf16> to vector<8x512xf32>
    %c0_58 = arith.constant 0 : index
    %c0_59 = arith.constant 0 : index
    %150 = vector.load %arg5[%c0_58, %c0_59] : memref<128x512xf32, #tpu.memory_space<vmem>>, vector<128x512xf32>
    %cst_60 = arith.constant dense<0.000000e+00> : vector<8x512xf32>
    %151 = tpu.matmul %98, %150, %cst_60 {dimension_numbers = #tpu.dot_dimension_numbers<[1], [0], [0], [1], [0, 0, 1, 1], [], []>} : vector<8x128xf32>, vector<128x512xf32>, vector<8x512xf32> -> vector<8x512xf32>
    %152 = arith.addf %149, %151 : vector<8x512xf32>
    %153 = vector.extract_strided_slice %152 {offsets = [0, 0], sizes = [8, 128], strides = [1, 1]} : vector<8x512xf32> to vector<8x128xf32>
    %cst_61 = arith.constant 5.000000e-01 : f32
    %154 = vector.broadcast %cst_61 : f32 to vector<8x128xf32>
    %155 = arith.mulf %154, %153 : vector<8x128xf32>
    %156 = math.tanh %155 : vector<8x128xf32>
    %cst_62 = arith.constant 1.000000e+00 : f32
    %157 = vector.broadcast %cst_62 : f32 to vector<8x128xf32>
    %158 = arith.addf %156, %157 : vector<8x128xf32>
    %cst_63 = arith.constant 5.000000e-01 : f32
    %159 = vector.broadcast %cst_63 : f32 to vector<8x128xf32>
    %160 = arith.mulf %159, %158 : vector<8x128xf32>
    %161 = vector.extract_strided_slice %152 {offsets = [0, 128], sizes = [8, 128], strides = [1, 1]} : vector<8x512xf32> to vector<8x128xf32>
    %cst_64 = arith.constant 5.000000e-01 : f32
    %162 = vector.broadcast %cst_64 : f32 to vector<8x128xf32>
    %163 = arith.mulf %162, %161 : vector<8x128xf32>
    %164 = math.tanh %163 : vector<8x128xf32>
    %cst_65 = arith.constant 1.000000e+00 : f32
    %165 = vector.broadcast %cst_65 : f32 to vector<8x128xf32>
    %166 = arith.addf %164, %165 : vector<8x128xf32>
    %cst_66 = arith.constant 5.000000e-01 : f32
    %167 = vector.broadcast %cst_66 : f32 to vector<8x128xf32>
    %168 = arith.mulf %167, %166 : vector<8x128xf32>
    %169 = vector.extract_strided_slice %152 {offsets = [0, 256], sizes = [8, 128], strides = [1, 1]} : vector<8x512xf32> to vector<8x128xf32>
    %170 = math.tanh %169 : vector<8x128xf32>
    %171 = vector.extract_strided_slice %152 {offsets = [0, 384], sizes = [8, 128], strides = [1, 1]} : vector<8x512xf32> to vector<8x128xf32>
    %cst_67 = arith.constant 5.000000e-01 : f32
    %172 = vector.broadcast %cst_67 : f32 to vector<8x128xf32>
    %173 = arith.mulf %172, %171 : vector<8x128xf32>
    %174 = math.tanh %173 : vector<8x128xf32>
    %cst_68 = arith.constant 1.000000e+00 : f32
    %175 = vector.broadcast %cst_68 : f32 to vector<8x128xf32>
    %176 = arith.addf %174, %175 : vector<8x128xf32>
    %cst_69 = arith.constant 5.000000e-01 : f32
    %177 = vector.broadcast %cst_69 : f32 to vector<8x128xf32>
    %178 = arith.mulf %177, %176 : vector<8x128xf32>
    %179 = arith.mulf %168, %99 : vector<8x128xf32>
    %180 = arith.mulf %160, %170 : vector<8x128xf32>
    %181 = arith.addf %179, %180 : vector<8x128xf32>
    %182 = math.tanh %181 : vector<8x128xf32>
    %183 = arith.mulf %178, %182 : vector<8x128xf32>
    %184 = vector.broadcast %102 : i32 to vector<8x128xi32>
    %185 = arith.cmpi sgt, %5, %184 : vector<8x128xi32>
    %186 = arith.select %185, %183, %98 : vector<8x128xi1>, vector<8x128xf32>
    %187 = arith.select %185, %181, %99 : vector<8x128xi1>, vector<8x128xf32>
    %c2_i32 = arith.constant 2 : i32
    %c4_i32_70 = arith.constant 4 : i32
    %188 = arith.muli %arg0, %c4_i32_70 : i32
    %189 = arith.addi %188, %c2_i32 : i32
    %c7_i32_71 = arith.constant 7 : i32
    %190 = arith.subi %c7_i32_71, %189 : i32
    %191 = arith.index_cast %c2_i32 : i32 to index
    %c0_72 = arith.constant 0 : index
    %c0_73 = arith.constant 0 : index
    %192 = vector.load %arg2[%191, %c0_72, %c0_73] : memref<4x8x512xbf16, #tpu.memory_space<vmem>>, vector<1x8x512xbf16>
    %193 = vector.shape_cast %192 : vector<1x8x512xbf16> to vector<8x512xbf16>
    %194 = arith.extf %193 : vector<8x512xbf16> to vector<8x512xf32>
    %c0_74 = arith.constant 0 : index
    %c0_75 = arith.constant 0 : index
    %195 = vector.load %arg4[%c0_74, %c0_75] : memref<128x512xf32, #tpu.memory_space<vmem>>, vector<128x512xf32>
    %cst_76 = arith.constant dense<0.000000e+00> : vector<8x512xf32>
    %196 = tpu.matmul %143, %195, %cst_76 {dimension_numbers = #tpu.dot_dimension_numbers<[1], [0], [0], [1], [0, 0, 1, 1], [], []>} : vector<8x128xf32>, vector<128x512xf32>, vector<8x512xf32> -> vector<8x512xf32>
    %197 = arith.addf %194, %196 : vector<8x512xf32>
    %198 = vector.extract_strided_slice %197 {offsets = [0, 0], sizes = [8, 128], strides = [1, 1]} : vector<8x512xf32> to vector<8x128xf32>
    %cst_77 = arith.constant 5.000000e-01 : f32
    %199 = vector.broadcast %cst_77 : f32 to vector<8x128xf32>
    %200 = arith.mulf %199, %198 : vector<8x128xf32>
    %201 = math.tanh %200 : vector<8x128xf32>
    %cst_78 = arith.constant 1.000000e+00 : f32
    %202 = vector.broadcast %cst_78 : f32 to vector<8x128xf32>
    %203 = arith.addf %201, %202 : vector<8x128xf32>
    %cst_79 = arith.constant 5.000000e-01 : f32
    %204 = vector.broadcast %cst_79 : f32 to vector<8x128xf32>
    %205 = arith.mulf %204, %203 : vector<8x128xf32>
    %206 = vector.extract_strided_slice %197 {offsets = [0, 128], sizes = [8, 128], strides = [1, 1]} : vector<8x512xf32> to vector<8x128xf32>
    %cst_80 = arith.constant 5.000000e-01 : f32
    %207 = vector.broadcast %cst_80 : f32 to vector<8x128xf32>
    %208 = arith.mulf %207, %206 : vector<8x128xf32>
    %209 = math.tanh %208 : vector<8x128xf32>
    %cst_81 = arith.constant 1.000000e+00 : f32
    %210 = vector.broadcast %cst_81 : f32 to vector<8x128xf32>
    %211 = arith.addf %209, %210 : vector<8x128xf32>
    %cst_82 = arith.constant 5.000000e-01 : f32
    %212 = vector.broadcast %cst_82 : f32 to vector<8x128xf32>
    %213 = arith.mulf %212, %211 : vector<8x128xf32>
    %214 = vector.extract_strided_slice %197 {offsets = [0, 256], sizes = [8, 128], strides = [1, 1]} : vector<8x512xf32> to vector<8x128xf32>
    %215 = math.tanh %214 : vector<8x128xf32>
    %216 = vector.extract_strided_slice %197 {offsets = [0, 384], sizes = [8, 128], strides = [1, 1]} : vector<8x512xf32> to vector<8x128xf32>
    %cst_83 = arith.constant 5.000000e-01 : f32
    %217 = vector.broadcast %cst_83 : f32 to vector<8x128xf32>
    %218 = arith.mulf %217, %216 : vector<8x128xf32>
    %219 = math.tanh %218 : vector<8x128xf32>
    %cst_84 = arith.constant 1.000000e+00 : f32
    %220 = vector.broadcast %cst_84 : f32 to vector<8x128xf32>
    %221 = arith.addf %219, %220 : vector<8x128xf32>
    %cst_85 = arith.constant 5.000000e-01 : f32
    %222 = vector.broadcast %cst_85 : f32 to vector<8x128xf32>
    %223 = arith.mulf %222, %221 : vector<8x128xf32>
    %224 = arith.mulf %213, %144 : vector<8x128xf32>
    %225 = arith.mulf %205, %215 : vector<8x128xf32>
    %226 = arith.addf %224, %225 : vector<8x128xf32>
    %227 = math.tanh %226 : vector<8x128xf32>
    %228 = arith.mulf %223, %227 : vector<8x128xf32>
    %229 = vector.broadcast %189 : i32 to vector<8x128xi32>
    %230 = arith.cmpi sgt, %5, %229 : vector<8x128xi32>
    %231 = arith.select %230, %228, %143 : vector<8x128xi1>, vector<8x128xf32>
    %232 = arith.select %230, %226, %144 : vector<8x128xi1>, vector<8x128xf32>
    %c3_i32_86 = arith.constant 3 : i32
    %233 = arith.subi %c3_i32_86, %c2_i32 : i32
    %234 = arith.index_cast %233 : i32 to index
    %c0_87 = arith.constant 0 : index
    %c0_88 = arith.constant 0 : index
    %235 = vector.load %arg3[%234, %c0_87, %c0_88] : memref<4x8x512xbf16, #tpu.memory_space<vmem>>, vector<1x8x512xbf16>
    %236 = vector.shape_cast %235 : vector<1x8x512xbf16> to vector<8x512xbf16>
    %237 = arith.extf %236 : vector<8x512xbf16> to vector<8x512xf32>
    %c0_89 = arith.constant 0 : index
    %c0_90 = arith.constant 0 : index
    %238 = vector.load %arg5[%c0_89, %c0_90] : memref<128x512xf32, #tpu.memory_space<vmem>>, vector<128x512xf32>
    %cst_91 = arith.constant dense<0.000000e+00> : vector<8x512xf32>
    %239 = tpu.matmul %186, %238, %cst_91 {dimension_numbers = #tpu.dot_dimension_numbers<[1], [0], [0], [1], [0, 0, 1, 1], [], []>} : vector<8x128xf32>, vector<128x512xf32>, vector<8x512xf32> -> vector<8x512xf32>
    %240 = arith.addf %237, %239 : vector<8x512xf32>
    %241 = vector.extract_strided_slice %240 {offsets = [0, 0], sizes = [8, 128], strides = [1, 1]} : vector<8x512xf32> to vector<8x128xf32>
    %cst_92 = arith.constant 5.000000e-01 : f32
    %242 = vector.broadcast %cst_92 : f32 to vector<8x128xf32>
    %243 = arith.mulf %242, %241 : vector<8x128xf32>
    %244 = math.tanh %243 : vector<8x128xf32>
    %cst_93 = arith.constant 1.000000e+00 : f32
    %245 = vector.broadcast %cst_93 : f32 to vector<8x128xf32>
    %246 = arith.addf %244, %245 : vector<8x128xf32>
    %cst_94 = arith.constant 5.000000e-01 : f32
    %247 = vector.broadcast %cst_94 : f32 to vector<8x128xf32>
    %248 = arith.mulf %247, %246 : vector<8x128xf32>
    %249 = vector.extract_strided_slice %240 {offsets = [0, 128], sizes = [8, 128], strides = [1, 1]} : vector<8x512xf32> to vector<8x128xf32>
    %cst_95 = arith.constant 5.000000e-01 : f32
    %250 = vector.broadcast %cst_95 : f32 to vector<8x128xf32>
    %251 = arith.mulf %250, %249 : vector<8x128xf32>
    %252 = math.tanh %251 : vector<8x128xf32>
    %cst_96 = arith.constant 1.000000e+00 : f32
    %253 = vector.broadcast %cst_96 : f32 to vector<8x128xf32>
    %254 = arith.addf %252, %253 : vector<8x128xf32>
    %cst_97 = arith.constant 5.000000e-01 : f32
    %255 = vector.broadcast %cst_97 : f32 to vector<8x128xf32>
    %256 = arith.mulf %255, %254 : vector<8x128xf32>
    %257 = vector.extract_strided_slice %240 {offsets = [0, 256], sizes = [8, 128], strides = [1, 1]} : vector<8x512xf32> to vector<8x128xf32>
    %258 = math.tanh %257 : vector<8x128xf32>
    %259 = vector.extract_strided_slice %240 {offsets = [0, 384], sizes = [8, 128], strides = [1, 1]} : vector<8x512xf32> to vector<8x128xf32>
    %cst_98 = arith.constant 5.000000e-01 : f32
    %260 = vector.broadcast %cst_98 : f32 to vector<8x128xf32>
    %261 = arith.mulf %260, %259 : vector<8x128xf32>
    %262 = math.tanh %261 : vector<8x128xf32>
    %cst_99 = arith.constant 1.000000e+00 : f32
    %263 = vector.broadcast %cst_99 : f32 to vector<8x128xf32>
    %264 = arith.addf %262, %263 : vector<8x128xf32>
    %cst_100 = arith.constant 5.000000e-01 : f32
    %265 = vector.broadcast %cst_100 : f32 to vector<8x128xf32>
    %266 = arith.mulf %265, %264 : vector<8x128xf32>
    %267 = arith.mulf %256, %187 : vector<8x128xf32>
    %268 = arith.mulf %248, %258 : vector<8x128xf32>
    %269 = arith.addf %267, %268 : vector<8x128xf32>
    %270 = math.tanh %269 : vector<8x128xf32>
    %271 = arith.mulf %266, %270 : vector<8x128xf32>
    %272 = vector.broadcast %190 : i32 to vector<8x128xi32>
    %273 = arith.cmpi sgt, %5, %272 : vector<8x128xi32>
    %274 = arith.select %273, %271, %186 : vector<8x128xi1>, vector<8x128xf32>
    %275 = arith.select %273, %269, %187 : vector<8x128xi1>, vector<8x128xf32>
    %c3_i32_101 = arith.constant 3 : i32
    %c4_i32_102 = arith.constant 4 : i32
    %276 = arith.muli %arg0, %c4_i32_102 : i32
    %277 = arith.addi %276, %c3_i32_101 : i32
    %c7_i32_103 = arith.constant 7 : i32
    %278 = arith.subi %c7_i32_103, %277 : i32
    %279 = arith.index_cast %c3_i32_101 : i32 to index
    %c0_104 = arith.constant 0 : index
    %c0_105 = arith.constant 0 : index
    %280 = vector.load %arg2[%279, %c0_104, %c0_105] : memref<4x8x512xbf16, #tpu.memory_space<vmem>>, vector<1x8x512xbf16>
    %281 = vector.shape_cast %280 : vector<1x8x512xbf16> to vector<8x512xbf16>
    %282 = arith.extf %281 : vector<8x512xbf16> to vector<8x512xf32>
    %c0_106 = arith.constant 0 : index
    %c0_107 = arith.constant 0 : index
    %283 = vector.load %arg4[%c0_106, %c0_107] : memref<128x512xf32, #tpu.memory_space<vmem>>, vector<128x512xf32>
    %cst_108 = arith.constant dense<0.000000e+00> : vector<8x512xf32>
    %284 = tpu.matmul %231, %283, %cst_108 {dimension_numbers = #tpu.dot_dimension_numbers<[1], [0], [0], [1], [0, 0, 1, 1], [], []>} : vector<8x128xf32>, vector<128x512xf32>, vector<8x512xf32> -> vector<8x512xf32>
    %285 = arith.addf %282, %284 : vector<8x512xf32>
    %286 = vector.extract_strided_slice %285 {offsets = [0, 0], sizes = [8, 128], strides = [1, 1]} : vector<8x512xf32> to vector<8x128xf32>
    %cst_109 = arith.constant 5.000000e-01 : f32
    %287 = vector.broadcast %cst_109 : f32 to vector<8x128xf32>
    %288 = arith.mulf %287, %286 : vector<8x128xf32>
    %289 = math.tanh %288 : vector<8x128xf32>
    %cst_110 = arith.constant 1.000000e+00 : f32
    %290 = vector.broadcast %cst_110 : f32 to vector<8x128xf32>
    %291 = arith.addf %289, %290 : vector<8x128xf32>
    %cst_111 = arith.constant 5.000000e-01 : f32
    %292 = vector.broadcast %cst_111 : f32 to vector<8x128xf32>
    %293 = arith.mulf %292, %291 : vector<8x128xf32>
    %294 = vector.extract_strided_slice %285 {offsets = [0, 128], sizes = [8, 128], strides = [1, 1]} : vector<8x512xf32> to vector<8x128xf32>
    %cst_112 = arith.constant 5.000000e-01 : f32
    %295 = vector.broadcast %cst_112 : f32 to vector<8x128xf32>
    %296 = arith.mulf %295, %294 : vector<8x128xf32>
    %297 = math.tanh %296 : vector<8x128xf32>
    %cst_113 = arith.constant 1.000000e+00 : f32
    %298 = vector.broadcast %cst_113 : f32 to vector<8x128xf32>
    %299 = arith.addf %297, %298 : vector<8x128xf32>
    %cst_114 = arith.constant 5.000000e-01 : f32
    %300 = vector.broadcast %cst_114 : f32 to vector<8x128xf32>
    %301 = arith.mulf %300, %299 : vector<8x128xf32>
    %302 = vector.extract_strided_slice %285 {offsets = [0, 256], sizes = [8, 128], strides = [1, 1]} : vector<8x512xf32> to vector<8x128xf32>
    %303 = math.tanh %302 : vector<8x128xf32>
    %304 = vector.extract_strided_slice %285 {offsets = [0, 384], sizes = [8, 128], strides = [1, 1]} : vector<8x512xf32> to vector<8x128xf32>
    %cst_115 = arith.constant 5.000000e-01 : f32
    %305 = vector.broadcast %cst_115 : f32 to vector<8x128xf32>
    %306 = arith.mulf %305, %304 : vector<8x128xf32>
    %307 = math.tanh %306 : vector<8x128xf32>
    %cst_116 = arith.constant 1.000000e+00 : f32
    %308 = vector.broadcast %cst_116 : f32 to vector<8x128xf32>
    %309 = arith.addf %307, %308 : vector<8x128xf32>
    %cst_117 = arith.constant 5.000000e-01 : f32
    %310 = vector.broadcast %cst_117 : f32 to vector<8x128xf32>
    %311 = arith.mulf %310, %309 : vector<8x128xf32>
    %312 = arith.mulf %301, %232 : vector<8x128xf32>
    %313 = arith.mulf %293, %303 : vector<8x128xf32>
    %314 = arith.addf %312, %313 : vector<8x128xf32>
    %315 = math.tanh %314 : vector<8x128xf32>
    %316 = arith.mulf %311, %315 : vector<8x128xf32>
    %317 = vector.broadcast %277 : i32 to vector<8x128xi32>
    %318 = arith.cmpi sgt, %5, %317 : vector<8x128xi32>
    %319 = arith.select %318, %316, %231 : vector<8x128xi1>, vector<8x128xf32>
    %320 = arith.select %318, %314, %232 : vector<8x128xi1>, vector<8x128xf32>
    %c3_i32_118 = arith.constant 3 : i32
    %321 = arith.subi %c3_i32_118, %c3_i32_101 : i32
    %322 = arith.index_cast %321 : i32 to index
    %c0_119 = arith.constant 0 : index
    %c0_120 = arith.constant 0 : index
    %323 = vector.load %arg3[%322, %c0_119, %c0_120] : memref<4x8x512xbf16, #tpu.memory_space<vmem>>, vector<1x8x512xbf16>
    %324 = vector.shape_cast %323 : vector<1x8x512xbf16> to vector<8x512xbf16>
    %325 = arith.extf %324 : vector<8x512xbf16> to vector<8x512xf32>
    %c0_121 = arith.constant 0 : index
    %c0_122 = arith.constant 0 : index
    %326 = vector.load %arg5[%c0_121, %c0_122] : memref<128x512xf32, #tpu.memory_space<vmem>>, vector<128x512xf32>
    %cst_123 = arith.constant dense<0.000000e+00> : vector<8x512xf32>
    %327 = tpu.matmul %274, %326, %cst_123 {dimension_numbers = #tpu.dot_dimension_numbers<[1], [0], [0], [1], [0, 0, 1, 1], [], []>} : vector<8x128xf32>, vector<128x512xf32>, vector<8x512xf32> -> vector<8x512xf32>
    %328 = arith.addf %325, %327 : vector<8x512xf32>
    %329 = vector.extract_strided_slice %328 {offsets = [0, 0], sizes = [8, 128], strides = [1, 1]} : vector<8x512xf32> to vector<8x128xf32>
    %cst_124 = arith.constant 5.000000e-01 : f32
    %330 = vector.broadcast %cst_124 : f32 to vector<8x128xf32>
    %331 = arith.mulf %330, %329 : vector<8x128xf32>
    %332 = math.tanh %331 : vector<8x128xf32>
    %cst_125 = arith.constant 1.000000e+00 : f32
    %333 = vector.broadcast %cst_125 : f32 to vector<8x128xf32>
    %334 = arith.addf %332, %333 : vector<8x128xf32>
    %cst_126 = arith.constant 5.000000e-01 : f32
    %335 = vector.broadcast %cst_126 : f32 to vector<8x128xf32>
    %336 = arith.mulf %335, %334 : vector<8x128xf32>
    %337 = vector.extract_strided_slice %328 {offsets = [0, 128], sizes = [8, 128], strides = [1, 1]} : vector<8x512xf32> to vector<8x128xf32>
    %cst_127 = arith.constant 5.000000e-01 : f32
    %338 = vector.broadcast %cst_127 : f32 to vector<8x128xf32>
    %339 = arith.mulf %338, %337 : vector<8x128xf32>
    %340 = math.tanh %339 : vector<8x128xf32>
    %cst_128 = arith.constant 1.000000e+00 : f32
    %341 = vector.broadcast %cst_128 : f32 to vector<8x128xf32>
    %342 = arith.addf %340, %341 : vector<8x128xf32>
    %cst_129 = arith.constant 5.000000e-01 : f32
    %343 = vector.broadcast %cst_129 : f32 to vector<8x128xf32>
    %344 = arith.mulf %343, %342 : vector<8x128xf32>
    %345 = vector.extract_strided_slice %328 {offsets = [0, 256], sizes = [8, 128], strides = [1, 1]} : vector<8x512xf32> to vector<8x128xf32>
    %346 = math.tanh %345 : vector<8x128xf32>
    %347 = vector.extract_strided_slice %328 {offsets = [0, 384], sizes = [8, 128], strides = [1, 1]} : vector<8x512xf32> to vector<8x128xf32>
    %cst_130 = arith.constant 5.000000e-01 : f32
    %348 = vector.broadcast %cst_130 : f32 to vector<8x128xf32>
    %349 = arith.mulf %348, %347 : vector<8x128xf32>
    %350 = math.tanh %349 : vector<8x128xf32>
    %cst_131 = arith.constant 1.000000e+00 : f32
    %351 = vector.broadcast %cst_131 : f32 to vector<8x128xf32>
    %352 = arith.addf %350, %351 : vector<8x128xf32>
    %cst_132 = arith.constant 5.000000e-01 : f32
    %353 = vector.broadcast %cst_132 : f32 to vector<8x128xf32>
    %354 = arith.mulf %353, %352 : vector<8x128xf32>
    %355 = arith.mulf %344, %275 : vector<8x128xf32>
    %356 = arith.mulf %336, %346 : vector<8x128xf32>
    %357 = arith.addf %355, %356 : vector<8x128xf32>
    %358 = math.tanh %357 : vector<8x128xf32>
    %359 = arith.mulf %354, %358 : vector<8x128xf32>
    %360 = vector.broadcast %278 : i32 to vector<8x128xi32>
    %361 = arith.cmpi sgt, %5, %360 : vector<8x128xi32>
    %362 = arith.select %361, %359, %274 : vector<8x128xi1>, vector<8x128xf32>
    %363 = arith.select %361, %357, %275 : vector<8x128xi1>, vector<8x128xf32>
    %c4_i32_133 = arith.constant 4 : i32
    %c0_134 = arith.constant 0 : index
    %c0_135 = arith.constant 0 : index
    %c0_136 = arith.constant 0 : index
    %364 = vector.load %arg6[%c0_134, %c0_135, %c0_136] : memref<2x8x128xf32, #tpu.memory_space<vmem>>, vector<1x8x128xf32>
    %365 = vector.shape_cast %364 : vector<1x8x128xf32> to vector<8x128xf32>
    %366 = vector.shape_cast %319 : vector<8x128xf32> to vector<1x8x128xf32>
    tpu.vector_store %arg6[%c0_134, %c0_135, %c0_136], %366 {strides = array<i32>} : memref<2x8x128xf32, #tpu.memory_space<vmem>>, vector<1x8x128xf32>,
    %c0_137 = arith.constant 0 : index
    %c0_138 = arith.constant 0 : index
    %367 = vector.load %arg7[%c0_137, %c0_138] : memref<8x128xf32, #tpu.memory_space<vmem>>, vector<8x128xf32>
    tpu.vector_store %arg7[%c0_137, %c0_138], %320 {strides = array<i32>} : memref<8x128xf32, #tpu.memory_space<vmem>>, vector<8x128xf32>,
    %c1_139 = arith.constant 1 : index
    %c0_140 = arith.constant 0 : index
    %c0_141 = arith.constant 0 : index
    %368 = vector.load %arg6[%c1_139, %c0_140, %c0_141] : memref<2x8x128xf32, #tpu.memory_space<vmem>>, vector<1x8x128xf32>
    %369 = vector.shape_cast %368 : vector<1x8x128xf32> to vector<8x128xf32>
    %370 = vector.shape_cast %362 : vector<8x128xf32> to vector<1x8x128xf32>
    tpu.vector_store %arg6[%c1_139, %c0_140, %c0_141], %370 {strides = array<i32>} : memref<2x8x128xf32, #tpu.memory_space<vmem>>, vector<1x8x128xf32>,
    %c0_142 = arith.constant 0 : index
    %c0_143 = arith.constant 0 : index
    %371 = vector.load %arg8[%c0_142, %c0_143] : memref<8x128xf32, #tpu.memory_space<vmem>>, vector<8x128xf32>
    tpu.vector_store %arg8[%c0_142, %c0_143], %363 {strides = array<i32>} : memref<8x128xf32, #tpu.memory_space<vmem>>, vector<8x128xf32>,
    return
  }
  func.func @transform_0(%arg0: i32) -> (i32, i32) {
    %c0_i32 = arith.constant 0 : i32
    %c0_i32_0 = arith.constant 0 : i32
    %c0_i32_1 = arith.constant 0 : i32
    return %c0_i32, %c0_i32_0 : i32, i32
  }
  func.func @transform_1(%arg0: i32) -> (i32, i32, i32) {
    %c0_i32 = arith.constant 0 : i32
    %c0_i32_0 = arith.constant 0 : i32
    %c0_i32_1 = arith.constant 0 : i32
    return %arg0, %c0_i32, %c0_i32_0 : i32, i32, i32
  }
  func.func @transform_2(%arg0: i32) -> (i32, i32, i32) {
    %c1_i32 = arith.constant 1 : i32
    %0 = arith.subi %c1_i32, %arg0 : i32
    %c0_i32 = arith.constant 0 : i32
    %c0_i32_0 = arith.constant 0 : i32
    %c0_i32_1 = arith.constant 0 : i32
    return %0, %c0_i32, %c0_i32_0 : i32, i32, i32
  }
  func.func @transform_3(%arg0: i32) -> (i32, i32) {
    %c0_i32 = arith.constant 0 : i32
    %c0_i32_0 = arith.constant 0 : i32
    %c0_i32_1 = arith.constant 0 : i32
    return %c0_i32, %c0_i32_0 : i32, i32
  }
  func.func @transform_4(%arg0: i32) -> (i32, i32) {
    %c0_i32 = arith.constant 0 : i32
    %c0_i32_0 = arith.constant 0 : i32
    %c0_i32_1 = arith.constant 0 : i32
    return %c0_i32, %c0_i32_0 : i32, i32
  }
  func.func @transform_5(%arg0: i32) -> (i32, i32, i32) {
    %c0_i32 = arith.constant 0 : i32
    %c0_i32_0 = arith.constant 0 : i32
    %c0_i32_1 = arith.constant 0 : i32
    %c0_i32_2 = arith.constant 0 : i32
    return %c0_i32, %c0_i32_0, %c0_i32_1 : i32, i32, i32
  }
}

</mosaic_0001>

<bundles_post_ra>
// kernel: rnn2one_forward.1
= control target key start
LH: loop header
LB: loop body
LE: loop exit
PB: predicated region body
PF: predicated region fallthrough
CT: control target
= control target key end

     0   :  { %s2517_s18 = smov 0   ;;  %s3477_s0 = inlined_call_operand.vmem [shape: s32[8,1], index: 0, kind: input, shape index: {}]   ;;  %s3478_s1 = inlined_call_operand.vmem [shape: bf16[8,8,512], index: 1, kind: input, shape index: {}]   ;;  %s3479_s2 = inlined_call_operand.vmem [shape: bf16[8,8,512], index: 2, kind: input, shape index: {}]   ;;  %s3480_s3 = inlined_call_operand.vmem [shape: f32[128,512], index: 3, kind: input, shape index: {}]   ;;  %s3481_s4 = inlined_call_operand.vmem [shape: f32[128,512], index: 4, kind: input, shape index: {}]   ;;  %s3482_s5 = inlined_call_operand.vmem [shape: f32[2,8,128], index: 5, kind: output, shape index: {}]  }
   0x1 LB: > { %s1842_s19 = sadd.s32 4294967295, %s2482_s18   ;;  %p1845_p0 = scmp.ge.s32.totalorder %s2482_s18, 1  ;;  %s2482_s18 = sphi %s2517_s18, %s15_s18  }
   0x2   : > { %p200_p1 = scmp.lt.s32.totalorder %s2482_s18, 3 }
   0x4   : > { %p201_p2 = pnand %p1845_p0, %p200_p1 }
   0x6   : > { %204 = sbr.rel (%p201_p2) target bundleno = 1093 (0x445), region = 40 }
   0xd   : > { %s2525_s20 = sshll.u32 %s1842_s19, 2  ;;  %s238_s21 = ssub.s32 1, %s1842_s19 }
   0xe   : > { %p232_p3 = scmp.lt.s32.totalorder %s2525_s20, 7  ;;  %s1849_s22 = sshll.u32 %s238_s21, 2 }
   0xf   : > { %p240_p4 = scmp.lt.s32.totalorder %s1849_s22, 7  ;;  %p1852_p5 = scmp.ne.s32.totalorder %s1842_s19, 0 }
  0x10   : > { %s233_s23 = scalar_select %p232_p3, %s2525_s20, 7 }
  0x11   : > { %s3638_s22 = smov (!%p240_p4, %s1849_s22), 7  ;;  %250 = sbr.rel (%p1852_p5) target bundleno = 24 (0x18), region = 44 }
  0x12   : > { %s1870_s24 = sshll.u32 %s233_s23, 4  ;;  %s1871_s28 = sshll.u32 %s3638_s22, 4  ;;  %v2484_v0 = vmov (!%p1852_p5), 0.0  }
  0x13   : > { %s2532_s27 = scalar_lea.vmem %s3478_s1, %s1870_s24  ;;  %s2537_s6 = scalar_lea.vmem %s3479_s2, %s1871_s28  ;;  %251 = vst [vmem:[%s3482_s5] sm:$0xff] (!%p1852_p5), %v2484_v0  ;;  %252 = vst [vmem:[%s3482_s5 + $0x8] sm:$0xff] (!%p1852_p5), %v2484_v0 }
  0x14   : > { %253 = vst [vmem:[#allocation2] sm:$0xff] (!%p1852_p5), %v2484_v0  ;;  %254 = vst [vmem:[#allocation3] sm:$0xff] (!%p1852_p5), %v2484_v0 }
  0x18 PF: > { %v273_v1 = vld [vmem:[%s3480_s3 + $0x8] sm:$0xff]  ;;  %v272_v3 = vld [vmem:[%s3480_s3] sm:$0xff]  ;;  %v3483_v8 = vmov 0.0   ;;  %v275_v13 = vld [vmem:[%s3480_s3 + $0x18] sm:$0xff]  ;;  %v2486_v14 = vmov 0   ;;  %s265_s23 = ssub.s32 7, %s2525_s20 }
  0x19   : > { %v277_v2 = vld [vmem:[%s3480_s3 + $0x28] sm:$0xff]  ;;  %v276_v5 = vld [vmem:[%s3480_s3 + $0x20] sm:$0xff]  ;;  %400 = vmatprep.mubr.f32.mxu0 %v3483_v8  ;;  %471 = vmatprep.mubr.f32.mxu1 %v3483_v8  ;;  %v279_v15 = vld [vmem:[%s3480_s3 + $0x38] sm:$0xff]  ;;  %s743_s24 = sadd.s32 1, %s2525_s20  ;;  %s744_s25 = ssub.s32 6, %s2525_s20 }
  0x1a   : > { %v2554_v4 = vpack.c.bf16 %v277_v2, %v273_v1  ;;  %v281_v6 = vld [vmem:[%s3480_s3 + $0x48] sm:$0xff]  ;;  %v2567_v9 = vpack.c.bf16 %v276_v5, %v272_v3  ;;  %v280_v11 = vld [vmem:[%s3480_s3 + $0x40] sm:$0xff]  ;;  %2395 = vset.pattern.permute.xlu0 %v2486_v14  ;;  %v274_v16 = vld [vmem:[%s3480_s3 + $0x10] sm:$0xff]  ;;  %v2593_v19 = vpack.c.bf16 %v279_v15, %v275_v13  ;;  %s1095_s26 = sadd.s32 2, %s2525_s20  ;;  %s1096_s28 = ssub.s32 5, %s2525_s20 }
  0x1b   : > { %v285_v7 = vld [vmem:[%s3480_s3 + $0x68] sm:$0xff]  ;;  %v284_v12 = vld [vmem:[%s3480_s3 + $0x60] sm:$0xff]  ;;  %v278_v17 = vld [vmem:[%s3480_s3 + $0x30] sm:$0xff]  ;;  %s1448_s30 = ssub.s32 4, %s2525_s20 }
  0x1c   : > { %v2569_v10 = vpack.c.bf16 %v285_v7, %v281_v6  ;;  %1873 = vmatprep.subr.bf16.mxu0 %v2554_v4  ;;  %v2591_v18 = vpack.c.bf16 %v284_v12, %v280_v11  ;;  %v2595_v20 = vpack.c.bf16 %v278_v17, %v274_v16  ;;  %v289_v21 = vld [vmem:[%s3480_s3 + $0x88] sm:$0xff]  ;;  %v288_v23 = vld [vmem:[%s3480_s3 + $0x80] sm:$0xff]  ;;  %v283_v26 = vld [vmem:[%s3480_s3 + $0x58] sm:$0xff]  ;;  %1905 = vmatprep.subr.bf16.mxu1 %v2593_v19 }
  0x1d   : > { %1875 = vmatpush1.bf16.msra.mxu0 %v2567_v9  ;;  %v293_v22 = vld [vmem:[%s3480_s3 + $0xa8] sm:$0xff]  ;;  %v292_v25 = vld [vmem:[%s3480_s3 + $0xa0] sm:$0xff]  ;;  %v287_v27 = vld [vmem:[%s3480_s3 + $0x78] sm:$0xff] }
  0x1e   : > { %1877 = vmatprep.subr.bf16.mxu0 %v2569_v10  ;;  %v2607_v24 = vpack.c.bf16 %v293_v22, %v289_v21  ;;  %v2619_v28 = vpack.c.bf16 %v287_v27, %v283_v26  ;;  %v282_v29 = vld [vmem:[%s3480_s3 + $0x50] sm:$0xff]  ;;  %v297_v31 = vld [vmem:[%s3480_s3 + $0xc8] sm:$0xff]  ;;  %1907 = vmatpush1.bf16.msra.mxu1 %v2595_v20  ;;  %v2637_v34 = vpack.c.bf16 %v292_v25, %v288_v23  ;;  %v291_v35 = vld [vmem:[%s3480_s3 + $0x98] sm:$0xff] }
  0x1f   : > { %v286_v30 = vld [vmem:[%s3480_s3 + $0x70] sm:$0xff]  ;;  %v301_v33 = vld [vmem:[%s3480_s3 + $0xe8] sm:$0xff]  ;;  %v295_v36 = vld [vmem:[%s3480_s3 + $0xb8] sm:$0xff] }
  0x20   : > { %3546 = vst [vmem:[#allocation4_spill] sm:$0xff] %v2607_v24  ;;  %v2631_v32 = vpack.c.bf16 %v286_v30, %v282_v29  ;;  %3548 = vst [vmem:[#allocation6_spill] sm:$0xff] %v2637_v34  ;;  %1909 = vmatprep.subr.bf16.mxu1 %v2619_v28  ;;  %v290_v37 = vld [vmem:[%s3480_s3 + $0x90] sm:$0xff]  ;;  %v2650_v38 = vpack.c.bf16 %v301_v33, %v297_v31  ;;  %v296_v39 = vld [vmem:[%s3480_s3 + $0xc0] sm:$0xff]  ;;  %v2658_v41 = vpack.c.bf16 %v295_v36, %v291_v35 }
  0x21   : > { %1879 = vmatpush1.bf16.msra.mxu0 %v2591_v18  ;;  %v300_v40 = vld [vmem:[%s3480_s3 + $0xe0] sm:$0xff]  ;;  %v294_v42 = vld [vmem:[%s3480_s3 + $0xb0] sm:$0xff]  ;;  %v305_v43 = vld [vmem:[%s3480_s3 + $0x108] sm:$0xff] }
  0x22   : > { %3547 = vst [vmem:[#allocation5_spill] sm:$0xff] %v2631_v32  ;;  %1881 = vmatprep.subr.bf16.mxu0 %v2607_v24  ;;  %3549 = vst [vmem:[#allocation7_spill] sm:$0xff] %v2650_v38  ;;  %v309_v44 = vld [vmem:[%s3480_s3 + $0x128] sm:$0xff]  ;;  %v299_v45 = vld [vmem:[%s3480_s3 + $0xd8] sm:$0xff]  ;;  %1911 = vmatpush1.bf16.msra.mxu1 %v2631_v32  ;;  %v2673_v46 = vpack.c.bf16 %v294_v42, %v290_v37  ;;  %v2679_v48 = vpack.c.bf16 %v300_v40, %v296_v39 }
  0x23   : > { %3550 = vst [vmem:[#allocation8_spill] sm:$0xff] %v2658_v41  ;;  %v303_v47 = vld [vmem:[%s3480_s3 + $0xf8] sm:$0xff]  ;;  %1913 = vmatprep.subr.bf16.mxu1 %v2658_v41  ;;  %v304_v49 = vld [vmem:[%s3480_s3 + $0x100] sm:$0xff]  ;;  %v298_v51 = vld [vmem:[%s3480_s3 + $0xd0] sm:$0xff]  ;;  %v2694_v53 = vpack.c.bf16 %v309_v44, %v305_v43 }
  0x24   : > { %3551 = vst [vmem:[#allocation9_spill] sm:$0xff] %v2673_v46  ;;  %3552 = vst [vmem:[#allocation10_spill] sm:$0xff] %v2679_v48  ;;  %v2685_v50 = vpack.c.bf16 %v303_v47, %v299_v45  ;;  %v302_v52 = vld [vmem:[%s3480_s3 + $0xf0] sm:$0xff]  ;;  %v308_v54 = vld [vmem:[%s3480_s3 + $0x120] sm:$0xff] }
  0x25   : > { %1883 = vmatpush1.bf16.msra.mxu0 %v2637_v34  ;;  %3554 = vst [vmem:[#allocation12_spill] sm:$0xff] %v2694_v53  ;;  %v307_v55 = vld [vmem:[%s3480_s3 + $0x118] sm:$0xff]  ;;  %v313_v57 = vld [vmem:[%s3480_s3 + $0x148] sm:$0xff]  ;;  %v2712_v59 = vpack.c.bf16 %v302_v52, %v298_v51  ;;  %v2715_v60 = vpack.c.bf16 %v308_v54, %v304_v49  ;;  %v312_v61 = vld [vmem:[%s3480_s3 + $0x140] sm:$0xff] }
  0x26   : > { %3553 = vst [vmem:[#allocation11_spill] sm:$0xff] %v2685_v50  ;;  %1885 = vmatprep.subr.bf16.mxu0 %v2650_v38  ;;  %v311_v56 = vld [vmem:[%s3480_s3 + $0x138] sm:$0xff]  ;;  %v317_v58 = vld [vmem:[%s3480_s3 + $0x168] sm:$0xff]  ;;  %1915 = vmatpush1.bf16.msra.mxu1 %v2673_v46  ;;  %v306_v63 = vld [vmem:[%s3480_s3 + $0x110] sm:$0xff] }
  0x27   : > { %3555 = vst [vmem:[#allocation13_spill] sm:$0xff] %v2712_v59  ;;  %3556 = vst [vmem:[#allocation14_spill] sm:$0xff] %v2715_v60  ;;  %1917 = vmatprep.subr.bf16.mxu1 %v2685_v50  ;;  %v2721_v62 = vpack.c.bf16 %v311_v56, %v307_v55  ;;  %v310_v0 = vld [vmem:[%s3480_s3 + $0x130] sm:$0xff]  ;;  %v2730_v1 = vpack.c.bf16 %v317_v58, %v313_v57  ;;  %v316_v2 = vld [vmem:[%s3480_s3 + $0x160] sm:$0xff] }
  0x28   : > { %v315_v3 = vld [vmem:[%s3480_s3 + $0x158] sm:$0xff]  ;;  %v321_v6 = vld [vmem:[%s3480_s3 + $0x188] sm:$0xff]  ;;  %v2748_v11 = vpack.c.bf16 %v310_v0, %v306_v63  ;;  %v2751_v12 = vpack.c.bf16 %v316_v2, %v312_v61  ;;  %v320_v13 = vld [vmem:[%s3480_s3 + $0x180] sm:$0xff] }
  0x29   : > { %1887 = vmatpush1.bf16.msra.mxu0 %v2679_v48  ;;  %3557 = vst [vmem:[#allocation15_spill] sm:$0xff] %v2721_v62  ;;  %3558 = vst [vmem:[#allocation16_spill] sm:$0xff] %v2730_v1  ;;  %v319_v5 = vld [vmem:[%s3480_s3 + $0x178] sm:$0xff]  ;;  %v325_v7 = vld [vmem:[%s3480_s3 + $0x1a8] sm:$0xff] }
  0x2a   : > { %1889 = vmatprep.subr.bf16.mxu0 %v2694_v53  ;;  %1919 = vmatpush1.bf16.msra.mxu1 %v2712_v59  ;;  %3559 = vst [vmem:[#allocation17_spill] sm:$0xff] %v2748_v11  ;;  %3560 = vst [vmem:[#allocation18_spill] sm:$0xff] %v2751_v12  ;;  %v2757_v14 = vpack.c.bf16 %v319_v5, %v315_v3  ;;  %v314_v15 = vld [vmem:[%s3480_s3 + $0x150] sm:$0xff]  ;;  %v2766_v17 = vpack.c.bf16 %v325_v7, %v321_v6  ;;  %v324_v21 = vld [vmem:[%s3480_s3 + $0x1a0] sm:$0xff] }
  0x2b   : > { %1921 = vmatprep.subr.bf16.mxu1 %v2721_v62  ;;  %v318_v16 = vld [vmem:[%s3480_s3 + $0x170] sm:$0xff]  ;;  %v323_v22 = vld [vmem:[%s3480_s3 + $0x198] sm:$0xff]  ;;  %v329_v25 = vld [vmem:[%s3480_s3 + $0x1c8] sm:$0xff]  ;;  %v2787_v29 = vpack.c.bf16 %v324_v21, %v320_v13 }
  0x2c   : > { %3561 = vst [vmem:[#allocation19_spill] sm:$0xff] %v2757_v14  ;;  %3562 = vst [vmem:[#allocation20_spill] sm:$0xff] %v2766_v17  ;;  %v327_v23 = vld [vmem:[%s3480_s3 + $0x1b8] sm:$0xff]  ;;  %v333_v26 = vld [vmem:[%s3480_s3 + $0x1e8] sm:$0xff]  ;;  %v2784_v27 = vpack.c.bf16 %v318_v16, %v314_v15 }
  0x2d   : > { %1891 = vmatpush1.bf16.msra.mxu0 %v2715_v60  ;;  %3564 = vst [vmem:[#allocation22_spill] sm:$0xff] %v2787_v29  ;;  %v328_v30 = vld [vmem:[%s3480_s3 + $0x1c0] sm:$0xff]  ;;  %v2793_v31 = vpack.c.bf16 %v327_v23, %v323_v22  ;;  %v322_v33 = vld [vmem:[%s3480_s3 + $0x190] sm:$0xff]  ;;  %v2802_v36 = vpack.c.bf16 %v333_v26, %v329_v25  ;;  %v331_v39 = vld [vmem:[%s3480_s3 + $0x1d8] sm:$0xff] }
  0x2e   : > { %1893 = vmatprep.subr.bf16.mxu0 %v2730_v1  ;;  %1923 = vmatpush1.bf16.msra.mxu1 %v2748_v11  ;;  %3563 = vst [vmem:[#allocation21_spill] sm:$0xff] %v2784_v27  ;;  %v326_v35 = vld [vmem:[%s3480_s3 + $0x1b0] sm:$0xff]  ;;  %v332_v37 = vld [vmem:[%s3480_s3 + $0x1e0] sm:$0xff]  ;;  %v335_v40 = vld [vmem:[%s3480_s3 + $0x1f8] sm:$0xff] }
  0x2f   : > { %1925 = vmatprep.subr.bf16.mxu1 %v2757_v14  ;;  %3565 = vst [vmem:[#allocation23_spill] sm:$0xff] %v2793_v31  ;;  %3566 = vst [vmem:[#allocation24_spill] sm:$0xff] %v2802_v36  ;;  %v512_v42 = vld [vmem:[%s3481_s4 + $0x8] sm:$0xff]  ;;  %v2820_v44 = vpack.c.bf16 %v326_v35, %v322_v33  ;;  %v2823_v45 = vpack.c.bf16 %v332_v37, %v328_v30  ;;  %v511_v47 = vld [vmem:[%s3481_s4] sm:$0xff]  ;;  %v2829_v49 = vpack.c.bf16 %v335_v40, %v331_v39 }
  0x30   : > { %v516_v43 = vld [vmem:[%s3481_s4 + $0x28] sm:$0xff]  ;;  %v330_v51 = vld [vmem:[%s3480_s3 + $0x1d0] sm:$0xff]  ;;  %v515_v55 = vld [vmem:[%s3481_s4 + $0x20] sm:$0xff] }
  0x31   : > { %1895 = vmatpush1.bf16.msra.mxu0 %v2751_v12  ;;  %3567 = vst [vmem:[#allocation25_spill] sm:$0xff] %v2820_v44  ;;  %3568 = vst [vmem:[#allocation26_spill] sm:$0xff] %v2823_v45  ;;  %v334_v52 = vld [vmem:[%s3480_s3 + $0x1f0] sm:$0xff]  ;;  %v2838_v54 = vpack.c.bf16 %v516_v43, %v512_v42  ;;  %v514_v56 = vld [vmem:[%s3481_s4 + $0x18] sm:$0xff]  ;;  %v2864_v2 = vpack.c.bf16 %v515_v55, %v511_v47 }
  0x32   : > { %1897 = vmatprep.subr.bf16.mxu0 %v2766_v17  ;;  %1927 = vmatpush1.bf16.msra.mxu1 %v2784_v27  ;;  %3569 = vst [vmem:[#allocation27_spill] sm:$0xff] %v2829_v49  ;;  %v518_v57 = vld [vmem:[%s3481_s4 + $0x38] sm:$0xff]  ;;  %v520_v58 = vld [vmem:[%s3481_s4 + $0x48] sm:$0xff]  ;;  %v2859_v63 = vld [vmem:[%s3482_s5] sm:$0xff]  ;;  %v2861_v0 = vpack.c.bf16 %v334_v52, %v330_v51 }
  0x33   : > { %1929 = vmatprep.subr.bf16.mxu1 %v2793_v31  ;;  %3570 = vst [vmem:[#allocation28_spill] sm:$0xff] %v2838_v54  ;;  %v524_v61 = vld [vmem:[%s3481_s4 + $0x68] sm:$0xff]  ;;  %v519_v3 = vld [vmem:[%s3481_s4 + $0x40] sm:$0xff]  ;;  %v2870_v5 = vpack.c.bf16 %v518_v57, %v514_v56  ;;  %v513_v6 = vld [vmem:[%s3481_s4 + $0x10] sm:$0xff] }
  0x34   : > { %3571 = vst [vmem:[#allocation29_spill] sm:$0xff] %v2861_v0  ;;  %v517_v7 = vld [vmem:[%s3481_s4 + $0x30] sm:$0xff]  ;;  %v2879_v13 = vpack.c.bf16 %v524_v61, %v520_v58  ;;  %v523_v15 = vld [vmem:[%s3481_s4 + $0x60] sm:$0xff]  ;;  %v522_v16 = vld [vmem:[%s3481_s4 + $0x58] sm:$0xff] }
  0x35   : > { %1899 = vmatpush1.bf16.msra.mxu0 %v2787_v29  ;;  %3572 = vst [vmem:[#allocation30_spill] sm:$0xff] %v2870_v5  ;;  %v526_v21 = vld [vmem:[%s3481_s4 + $0x78] sm:$0xff]  ;;  %v528_v22 = vld [vmem:[%s3481_s4 + $0x88] sm:$0xff]  ;;  %v2898_v25 = vpack.c.bf16 %v517_v7, %v513_v6  ;;  %v2901_v26 = vpack.c.bf16 %v523_v15, %v519_v3  ;;  %v527_v30 = vld [vmem:[%s3481_s4 + $0x80] sm:$0xff] }
  0x36   : > { %1901 = vmatprep.subr.bf16.mxu0 %v2802_v36  ;;  %1931 = vmatpush1.bf16.msra.mxu1 %v2820_v44  ;;  %v532_v23 = vld [vmem:[%s3481_s4 + $0xa8] sm:$0xff]  ;;  %v2907_v33 = vpack.c.bf16 %v526_v21, %v522_v16  ;;  %v521_v35 = vld [vmem:[%s3481_s4 + $0x50] sm:$0xff]  ;;  %v531_v40 = vld [vmem:[%s3481_s4 + $0xa0] sm:$0xff] }
  0x37   : > { %1933 = vmatprep.subr.bf16.mxu1 %v2829_v49  ;;  %v525_v37 = vld [vmem:[%s3481_s4 + $0x70] sm:$0xff]  ;;  %v2916_v39 = vpack.c.bf16 %v532_v23, %v528_v22  ;;  %v530_v42 = vld [vmem:[%s3481_s4 + $0x98] sm:$0xff]  ;;  %v536_v47 = vld [vmem:[%s3481_s4 + $0xc8] sm:$0xff]  ;;  %v2940_v55 = vpack.c.bf16 %v531_v40, %v527_v30 }
  0x38   : > { %v534_v43 = vld [vmem:[%s3481_s4 + $0xb8] sm:$0xff]  ;;  %v540_v51 = vld [vmem:[%s3481_s4 + $0xe8] sm:$0xff]  ;;  %v2936_v52 = vpack.c.bf16 %v525_v37, %v521_v35  ;;  %v535_v56 = vld [vmem:[%s3481_s4 + $0xc0] sm:$0xff] }
  0x39   : > { %1903 = vmatpush1.bf16.msra.mxu0 %v2823_v45  ;;  %v2946_v57 = vpack.c.bf16 %v534_v43, %v530_v42  ;;  %v529_v58 = vld [vmem:[%s3481_s4 + $0x90] sm:$0xff]  ;;  %v2955_v3 = vpack.c.bf16 %v540_v51, %v536_v47  ;;  %v539_v6 = vld [vmem:[%s3481_s4 + $0xe0] sm:$0xff]  ;;  %v538_v7 = vld [vmem:[%s3481_s4 + $0xd8] sm:$0xff] }
  0x3a   : > { %1937 = vmatprep.subr.bf16.mxu0 %v2838_v54  ;;  %1935 = vmatpush1.bf16.msra.mxu1 %v2861_v0  ;;  %v533_v61 = vld [vmem:[%s3481_s4 + $0xb0] sm:$0xff]  ;;  %v542_v15 = vld [vmem:[%s3481_s4 + $0xf8] sm:$0xff]  ;;  %v544_v16 = vld [vmem:[%s3481_s4 + $0x108] sm:$0xff]  ;;  %v2979_v30 = vpack.c.bf16 %v539_v6, %v535_v56 }
  0x3b   : > { %1969 = vmatprep.subr.bf16.mxu1 %v2870_v5  ;;  %v548_v21 = vld [vmem:[%s3481_s4 + $0x128] sm:$0xff]  ;;  %v2973_v22 = vpack.c.bf16 %v533_v61, %v529_v58  ;;  %v255_v23 = vld [vmem:[%s3477_s0] sm:$0xff]  ;;  %v2985_v37 = vpack.c.bf16 %v542_v15, %v538_v7  ;;  %v537_v40 = vld [vmem:[%s3481_s4 + $0xd0] sm:$0xff] }
  0x3c   : > { %401 = vmatmul.mubr.f32.vlgmr.msra.gmra.mrb[0].mxu0 %v2859_v63  ;;  %3573 = vst [vmem:[#allocation31_spill] sm:$0xff] %v2979_v30  ;;  %v543_v35 = vld [vmem:[%s3481_s4 + $0x100] sm:$0xff]  ;;  %v541_v42 = vld [vmem:[%s3481_s4 + $0xf0] sm:$0xff]  ;;  %v2994_v43 = vpack.c.bf16 %v548_v21, %v544_v16  ;;  %v546_v51 = vld [vmem:[%s3481_s4 + $0x118] sm:$0xff]  ;;  %257 = vperm.xlu0 %2395, %v255_v23  }
  0x3d   : > { %1939 = vmatpush1.bf16.msra.mxu0 %v2864_v2  ;;  %639 = vmatprep.mubr.f32.mxu0 %v3483_v8  ;;  %v547_v47 = vld [vmem:[%s3481_s4 + $0x120] sm:$0xff]  ;;  %v550_v56 = vld [vmem:[%s3481_s4 + $0x138] sm:$0xff]  ;;  %v552_v58 = vld [vmem:[%s3481_s4 + $0x148] sm:$0xff]  ;;  %v3012_v6 = vpack.c.bf16 %v541_v42, %v537_v40 }
  0x3e   : > { %1941 = vmatprep.subr.bf16.mxu0 %v2879_v13  ;;  %472 = vmatmul.mubr.f32.vlgmr.msra.gmra.mrb[0].mxu1 %v2859_v63  ;;  %3574 = vst [vmem:[#allocation32_spill] sm:$0xff] %v2994_v43  ;;  %v556_v61 = vld [vmem:[%s3481_s4 + $0x168] sm:$0xff]  ;;  %v3015_v7 = vpack.c.bf16 %v547_v47, %v543_v35  ;;  %v551_v15 = vld [vmem:[%s3481_s4 + $0x140] sm:$0xff]  ;;  %v3021_v16 = vpack.c.bf16 %v550_v56, %v546_v51  ;;  %v545_v21 = vld [vmem:[%s3481_s4 + $0x110] sm:$0xff] }
  0x3f   : > { %1971 = vmatpush1.bf16.msra.mxu1 %v2898_v25  ;;  %710 = vmatprep.mubr.f32.mxu1 %v3483_v8  ;;  %3575 = vst [vmem:[#allocation33_spill] sm:$0xff] %v3012_v6  ;;  %v549_v23 = vld [vmem:[%s3481_s4 + $0x130] sm:$0xff]  ;;  %v3030_v35 = vpack.c.bf16 %v556_v61, %v552_v58  ;;  %v555_v40 = vld [vmem:[%s3481_s4 + $0x160] sm:$0xff]  ;;  %v554_v42 = vld [vmem:[%s3481_s4 + $0x158] sm:$0xff] }
  0x40   : > { %1973 = vmatprep.subr.bf16.mxu1 %v2907_v33  ;;  %3576 = vst [vmem:[#allocation34_spill] sm:$0xff] %v3015_v7  ;;  %3577 = vst [vmem:[#allocation35_spill] sm:$0xff] %v3021_v16  ;;  %v558_v47 = vld [vmem:[%s3481_s4 + $0x178] sm:$0xff]  ;;  %v560_v51 = vld [vmem:[%s3481_s4 + $0x188] sm:$0xff]  ;;  %v3048_v58 = vpack.c.bf16 %v549_v23, %v545_v21  ;;  %v3051_v61 = vpack.c.bf16 %v555_v40, %v551_v15 }
  0x41   : > { %1943 = vmatpush1.bf16.msra.mxu0 %v2901_v26  ;;  %3578 = vst [vmem:[#allocation36_spill] sm:$0xff] %v3030_v35  ;;  %v564_v56 = vld [vmem:[%s3481_s4 + $0x1a8] sm:$0xff]  ;;  %v559_v8 = vld [vmem:[%s3481_s4 + $0x180] sm:$0xff]  ;;  %v557_v21 = vld [vmem:[%s3481_s4 + $0x170] sm:$0xff] }
  0x42   : > { %1945 = vmatprep.subr.bf16.mxu0 %v2916_v39  ;;  %3579 = vst [vmem:[#allocation37_spill] sm:$0xff] %v3051_v61  ;;  %v3066_v15 = vpack.c.bf16 %v564_v56, %v560_v51  ;;  %v563_v23 = vld [vmem:[%s3481_s4 + $0x1a0] sm:$0xff]  ;;  %v562_v40 = vld [vmem:[%s3481_s4 + $0x198] sm:$0xff]  ;;  %v572_v51 = vld [vmem:[%s3481_s4 + $0x1e8] sm:$0xff] }
  0x43   : > { %1975 = vmatpush1.bf16.msra.mxu1 %v2936_v52 }
  0x44   : > { %1977 = vmatprep.subr.bf16.mxu1 %v2946_v57  ;;  %3580 = vst [vmem:[#allocation38_spill] sm:$0xff] %v3066_v15 }
  0x45   : > { %1947 = vmatpush1.bf16.msra.mxu0 %v2940_v55 }
  0x46   : > { %1949 = vmatprep.subr.bf16.mxu0 %v2955_v3 }
  0x47   : > { %1979 = vmatpush1.bf16.msra.mxu1 %v2973_v22 }
  0x48   : > { %1981 = vmatprep.subr.bf16.mxu1 %v2985_v37 }
  0x49   : > { %1951 = vmatpush1.bf16.msra.mxu0 %v2979_v30  ;;  %v553_v30 = vld [vmem:[%s3481_s4 + $0x150] sm:$0xff] }
  0x4a   : > { %1953 = vmatprep.subr.bf16.mxu0 %v2994_v43  ;;  %v3057_v43 = vpack.c.bf16 %v558_v47, %v554_v42  ;;  %v566_v42 = vld [vmem:[%s3481_s4 + $0x1b8] sm:$0xff]  ;;  %v568_v47 = vld [vmem:[%s3481_s4 + $0x1c8] sm:$0xff]  ;;  %v3084_v56 = vpack.c.bf16 %v557_v21, %v553_v30  ;;  %v565_v30 = vld [vmem:[%s3481_s4 + $0x1b0] sm:$0xff] }
  0x4b   : > { %1983 = vmatpush1.bf16.msra.mxu1 %v3012_v6  ;;  %v561_v6 = vld [vmem:[%s3481_s4 + $0x190] sm:$0xff]  ;;  %v571_v21 = vld [vmem:[%s3481_s4 + $0x1e0] sm:$0xff] }
  0x4c   : > { %1985 = vmatprep.subr.bf16.mxu1 %v3021_v16  ;;  %v3093_v16 = vpack.c.bf16 %v566_v42, %v562_v40  ;;  %v574_v40 = vld [vmem:[%s3481_s4 + $0x1f8] sm:$0xff]  ;;  %v3114_v42 = vpack.c.bf16 %v565_v30, %v561_v6 }
  0x4d   : > { %1955 = vmatpush1.bf16.msra.mxu0 %v3015_v7  ;;  %v567_v7 = vld [vmem:[%s3481_s4 + $0x1c0] sm:$0xff] }
  0x4e   : > { %1957 = vmatprep.subr.bf16.mxu0 %v3030_v35  ;;  %v3087_v35 = vpack.c.bf16 %v563_v23, %v559_v8  ;;  %v3102_v8 = vpack.c.bf16 %v572_v51, %v568_v47  ;;  %v570_v23 = vld [vmem:[%s3481_s4 + $0x1d8] sm:$0xff]  ;;  %v3117_v47 = vpack.c.bf16 %v571_v21, %v567_v7  ;;  %v3136_v7 = vld [vmem:[%s3482_s5 + $0x8] sm:$0xff] }
  0x4f   : > { %1987 = vmatpush1.bf16.msra.mxu1 %v3048_v58  ;;  %v3120_v51 = vpack.c.bf16 %v574_v40, %v570_v23  ;;  %v267_v21 = vld [vmem:[%s2532_s27 + $0x8] sm:$0xff] }
  0x50   : > { %1989 = vmatprep.subr.bf16.mxu1 %v3057_v43 }
  0x51   : > { %1959 = vmatpush1.bf16.msra.mxu0 %v3051_v61  ;;  %v573_v61 = vld [vmem:[%s3481_s4 + $0x1f0] sm:$0xff] }
  0x52   : > { %1961 = vmatprep.subr.bf16.mxu0 %v3066_v15  ;;  %v569_v15 = vld [vmem:[%s3481_s4 + $0x1d0] sm:$0xff] }
  0x53   : > { %1991 = vmatpush1.bf16.msra.mxu1 %v3084_v56  ;;  %v3130_v6 = vpack.c.bf16 %v573_v61, %v569_v15  ;;  %v3581_v61 = vmov 0.0   ;;  %v266_v15 = vld [vmem:[%s2532_s27] sm:$0xff] }
  0x54   : > { %1993 = vmatprep.subr.bf16.mxu1 %v3093_v16  ;;  %v268_v30 = vunpack.c.l.bf16 %v266_v15  ;;  %v269_v23 = vunpack.c.h.bf16 %v266_v15 }
  0x55   : > { %1963 = vmatpush1.bf16.msra.mxu0 %v3087_v35 }
  0x56   : > { %1965 = vmatprep.subr.bf16.mxu0 %v3102_v8 }
  0x57   : > { %1995 = vmatpush1.bf16.msra.mxu1 %v3114_v42 }
  0x58   : > { %1997 = vmatprep.subr.bf16.mxu1 %v3120_v51 }
  0x59   : > { %1967 = vmatpush1.bf16.msra.mxu0 %v3117_v47 }
  0x5a   : > { %2001 = vmatprep.subr.bf16.mxu0 %v2554_v4 }
  0x5b   : > { %1999 = vmatpush1.bf16.msra.mxu1 %v3130_v6 }
  0x5c   : > { %640 = vmatmul.mubr.f32.vlgmr.msra.gmra.mrb[2].mxu0 %v3136_v7  ;;  %2033 = vmatprep.subr.bf16.mxu1 %v2593_v19 }
  0x5d   : > { %2003 = vmatpush1.bf16.msra.mxu0 %v2567_v9  ;;  %816 = vmatprep.mubr.f32.mxu0 %v3581_v61 }
  0x5e   : > { %2005 = vmatprep.subr.bf16.mxu0 %v2569_v10  ;;  %711 = vmatmul.mubr.f32.vlgmr.msra.gmra.mrb[2].mxu1 %v3136_v7 }
  0x5f   : > { %2035 = vmatpush1.bf16.msra.mxu1 %v2595_v20  ;;  %887 = vmatprep.mubr.f32.mxu1 %v3581_v61 }
  0x60   : > { %2037 = vmatprep.subr.bf16.mxu1 %v2619_v28 }
  0x61   : > { %2007 = vmatpush1.bf16.msra.mxu0 %v2591_v18 }
  0x62   : > { %2009 = vmatprep.subr.bf16.mxu0 %v2607_v24 }
  0x63   : > { %2039 = vmatpush1.bf16.msra.mxu1 %v2631_v32 }
  0x64   : > { %2041 = vmatprep.subr.bf16.mxu1 %v2658_v41 }
  0x65   : > { %2011 = vmatpush1.bf16.msra.mxu0 %v2637_v34 }
  0x66   : > { %2013 = vmatprep.subr.bf16.mxu0 %v2650_v38 }
  0x67   : > { %2043 = vmatpush1.bf16.msra.mxu1 %v2673_v46 }
  0x68   : > { %2045 = vmatprep.subr.bf16.mxu1 %v2685_v50 }
  0x69   : > { %2015 = vmatpush1.bf16.msra.mxu0 %v2679_v48 }
  0x6a   : > { %2017 = vmatprep.subr.bf16.mxu0 %v2694_v53 }
  0x6b   : > { %2047 = vmatpush1.bf16.msra.mxu1 %v2712_v59 }
  0x6c   : > { %2049 = vmatprep.subr.bf16.mxu1 %v2721_v62 }
  0x6d   : > { %2019 = vmatpush1.bf16.msra.mxu0 %v2715_v60 }
  0x6e   : > { %2021 = vmatprep.subr.bf16.mxu0 %v2730_v1 }
  0x6f   : > { %2051 = vmatpush1.bf16.msra.mxu1 %v2748_v11 }
  0x70   : > { %2053 = vmatprep.subr.bf16.mxu1 %v2757_v14 }
  0x71   : > { %2023 = vmatpush1.bf16.msra.mxu0 %v2751_v12 }
  0x72   : > { %2025 = vmatprep.subr.bf16.mxu0 %v2766_v17 }
  0x73   : > { %2055 = vmatpush1.bf16.msra.mxu1 %v2784_v27 }
  0x74   : > { %2057 = vmatprep.subr.bf16.mxu1 %v2793_v31 }
  0x75   : > { %2027 = vmatpush1.bf16.msra.mxu0 %v2787_v29  ;;  %v270_v29 = vunpack.c.l.bf16 %v267_v21 }
  0x76   : > { %2029 = vmatprep.subr.bf16.mxu0 %v2802_v36 }
  0x77   : > { %2059 = vmatpush1.bf16.msra.mxu1 %v2820_v44 }
  0x78   : > { %2061 = vmatprep.subr.bf16.mxu1 %v2829_v49 }
  0x79   : > { %2031 = vmatpush1.bf16.msra.mxu0 %v2823_v45 }
  0x7a   : > { %2065 = vmatprep.subr.bf16.mxu0 %v2838_v54  ;;  %v271_v54 = vunpack.c.h.bf16 %v267_v21 }
  0x7b   : > { %2063 = vmatpush1.bf16.msra.mxu1 %v2861_v0 }
  0x7c   : > { %2097 = vmatprep.subr.bf16.mxu1 %v2870_v5 }
 0x10f   : > { %v402_v40 = vpop.f32.mrb[0].mxu0 }
 0x110   : > { %v478_v31 = vadd.f32 %v402_v40, %v268_v30  ;;  %v404_v36 = vpop.f32.mrb[1].mxu0 }
 0x111   : > { %v479_v17 = vadd.f32 %v404_v36, %v269_v23  ;;  %v473_v27 = vpop.f32.mrb[0].mxu1  ;;  %v260_v36 = vld [vmem:[#allocation2] sm:$0xff] }
 0x112   : > { %v482_v44 = vmul.f32 0.5, %v478_v31  ;;  %v480_v12 = vadd.f32 %v473_v27, %v270_v29  ;;  %v475_v45 = vpop.f32.mrb[1].mxu1  ;;  %v3180_v27 = vpop.permute.xlu0 %257  ;;  %v500_v29 = vstv %s2525_s20 }
 0x113   : > { %v486_v49 = vmul.f32 0.5, %v479_v17  ;;  %v481_v5 = vadd.f32 %v475_v45, %v271_v54  ;;  %vm3184_vm0 = vcmp.gt.s32.totalorder %v3180_v27, %v500_v29 }
 0x114   : > { %2396 = vtanh.f32 %v482_v44 }
 0x115   : > { %2398 = vtanh.f32 %v486_v49  ;;  %v491_v0 = vmul.f32 0.5, %v481_v5 }
 0x116   : > { %2400 = vtanh.f32 %v480_v12 }
 0x117   : > { %2402 = vtanh.f32 %v491_v0  ;;  %v1856_v0 = vld [vmem:[%s2537_s6 + $0x38] sm:$0xff] }
 0x11e   : > { %v2397_v14 = vpop.eup %2396 }
 0x11f   : > { %v2399_v1 = vpop.eup %2398  ;;  %v484_v15 = vadd.f32 1.0, %v2397_v14  ;;  %v1855_v14 = vld [vmem:[%s2537_s6 + $0x30] sm:$0xff] }
 0x120   : > { %v2401_v11 = vpop.eup %2400  ;;  %v488_v30 = vadd.f32 1.0, %v2399_v1  ;;  %v507_v54 = vunpack.c.l.bf16 %v1855_v14  ;;  %v508_v23 = vunpack.c.h.bf16 %v1855_v14 }
 0x121   : > { %v485_v31 = vmul.f32 0.5, %v484_v15  ;;  %v2403_v49 = vpop.eup %2402 }
 0x122   : > { %v489_v17 = vmul.f32 0.5, %v488_v30  ;;  %v493_v5 = vadd.f32 1.0, %v2403_v49 }
 0x123   : > { %v496_v44 = vmul.f32 %v2401_v11, %v485_v31  ;;  %v509_v11 = vunpack.c.l.bf16 %v1856_v0 }
 0x124   : > { %v495_v21 = vmul.f32 %v489_v17, %v260_v36  ;;  %v494_v31 = vmul.f32 0.5, %v493_v5  ;;  %v263_v5 = vld [vmem:[#allocation3] sm:$0xff] }
 0x126   : > { %v497_v45 = vadd.f32 %v496_v44, %v495_v21 }
 0x128   : > { %2404 = vtanh.f32 %v497_v45  ;;  %v3190_v1 = vsel %vm3184_vm0, %v497_v45, %v260_v36  ;;  %v510_v45 = vunpack.c.h.bf16 %v1856_v0 }
 0x12f   : > { %v641_v40 = vpop.f32.mrb[2].mxu0 }
 0x130   : > { %v717_v15 = vadd.f32 %v641_v40, %v507_v54  ;;  %v643_v30 = vpop.f32.mrb[3].mxu0 }
 0x131   : > { %v718_v17 = vadd.f32 %v643_v30, %v508_v23  ;;  %v712_v44 = vpop.f32.mrb[2].mxu1 }
 0x132   : > { %v2405_v29 = vpop.eup %2404  ;;  %v721_v60 = vmul.f32 0.5, %v717_v15  ;;  %v719_v53 = vadd.f32 %v712_v44, %v509_v11  ;;  %v714_v36 = vpop.f32.mrb[3].mxu1  ;;  %v3584_v11 = vld [vmem:[#allocation31_spill] sm:$0xff]  ;;  %v3585_v15 = vld [vmem:[#allocation33_spill] sm:$0xff] }
 0x133   : > { %v499_v21 = vmul.f32 %v2405_v29, %v494_v31  ;;  %v725_v62 = vmul.f32 0.5, %v718_v17  ;;  %v720_v49 = vadd.f32 %v714_v36, %v510_v45  ;;  %v3586_v31 = vld [vmem:[#allocation32_spill] sm:$0xff]  ;;  %v3587_v17 = vld [vmem:[#allocation35_spill] sm:$0xff]  ;;  %v739_v29 = vstv %s265_s23 }
 0x134   : > { %2406 = vtanh.f32 %v721_v60  ;;  %vm740_vm1 = vcmp.gt.s32.totalorder %v3180_v27, %v739_v29  ;;  %v3589_v36 = vld [vmem:[#allocation36_spill] sm:$0xff]  ;;  %v3597_v29 = vld [vmem:[#allocation19_spill] sm:$0xff] }
 0x135   : > { %2408 = vtanh.f32 %v725_v62  ;;  %v3197_v14 = vsel %vm3184_vm0, %v499_v21, %v2859_v63  ;;  %v3588_v21 = vld [vmem:[#allocation34_spill] sm:$0xff] }
 0x136   : > { %2410 = vtanh.f32 %v719_v53  ;;  %817 = vmatmul.mubr.f32.vlgmr.msra.gmra.mrb[4].mxu0 %v3197_v14  ;;  %888 = vmatmul.mubr.f32.vlgmr.msra.gmra.mrb[4].mxu1 %v3197_v14  ;;  %v730_v53 = vmul.f32 0.5, %v720_v49 }
 0x137   : > { %2067 = vmatpush1.bf16.msra.mxu0 %v2864_v2  ;;  %2099 = vmatpush1.bf16.msra.mxu1 %v2898_v25 }
 0x138   : > { %2069 = vmatprep.subr.bf16.mxu0 %v2879_v13  ;;  %2101 = vmatprep.subr.bf16.mxu1 %v2907_v33  ;;  %2412 = vtanh.f32 %v730_v53  ;;  %v3590_v53 = vld [vmem:[#allocation37_spill] sm:$0xff] }
 0x139   : > { %991 = vmatprep.mubr.f32.mxu0 %v3581_v61  ;;  %1062 = vmatprep.mubr.f32.mxu1 %v3581_v61 }
 0x13b   : > { %2071 = vmatpush1.bf16.msra.mxu0 %v2901_v26  ;;  %2103 = vmatpush1.bf16.msra.mxu1 %v2936_v52 }
 0x13c   : > { %2073 = vmatprep.subr.bf16.mxu0 %v2916_v39  ;;  %2105 = vmatprep.subr.bf16.mxu1 %v2946_v57 }
 0x13e   : > { %v2407_v60 = vpop.eup %2406 }
 0x13f   : > { %v2409_v62 = vpop.eup %2408  ;;  %v723_v63 = vadd.f32 1.0, %v2407_v60  ;;  %2075 = vmatpush1.bf16.msra.mxu0 %v2940_v55  ;;  %2107 = vmatpush1.bf16.msra.mxu1 %v2973_v22  ;;  %v3591_v60 = vld [vmem:[#allocation38_spill] sm:$0xff] }
 0x140   : > { %v2411_v12 = vpop.eup %2410  ;;  %v727_v54 = vadd.f32 1.0, %v2409_v62  ;;  %2077 = vmatprep.subr.bf16.mxu0 %v2955_v3  ;;  %2109 = vmatprep.subr.bf16.mxu1 %v2985_v37 }
 0x141   : > { %v724_v0 = vmul.f32 0.5, %v723_v63 }
 0x142   : > { %v728_v23 = vmul.f32 0.5, %v727_v54  ;;  %v2413_v49 = vpop.eup %2412 }
 0x143   : > { %v735_v40 = vmul.f32 %v2411_v12, %v724_v0  ;;  %2079 = vmatpush1.bf16.msra.mxu0 %v3584_v11  ;;  %2111 = vmatpush1.bf16.msra.mxu1 %v3585_v15  ;;  %v732_v62 = vadd.f32 1.0, %v2413_v49  ;;  %v3599_v49 = vld [vmem:[#allocation21_spill] sm:$0xff] }
 0x144   : > { %v734_v30 = vmul.f32 %v728_v23, %v263_v5  ;;  %2081 = vmatprep.subr.bf16.mxu0 %v3586_v31  ;;  %2113 = vmatprep.subr.bf16.mxu1 %v3587_v17  ;;  %v3594_v23 = vld [vmem:[#allocation14_spill] sm:$0xff] }
 0x145   : > { %v733_v63 = vmul.f32 0.5, %v732_v62  ;;  %v3600_v62 = vld [vmem:[#allocation20_spill] sm:$0xff] }
 0x146   : > { %v736_v44 = vadd.f32 %v735_v40, %v734_v30  ;;  %v3595_v40 = vld [vmem:[#allocation17_spill] sm:$0xff]  ;;  %v3596_v30 = vld [vmem:[#allocation16_spill] sm:$0xff] }
 0x147   : > { %2083 = vmatpush1.bf16.msra.mxu0 %v3588_v21  ;;  %2115 = vmatpush1.bf16.msra.mxu1 %v3048_v58 }
 0x148   : > { %2414 = vtanh.f32 %v736_v44  ;;  %2085 = vmatprep.subr.bf16.mxu0 %v3589_v36  ;;  %2117 = vmatprep.subr.bf16.mxu1 %v3057_v43  ;;  %v3227_v45 = vsel %vm740_vm1, %v736_v44, %v263_v5  ;;  %v3593_v5 = vld [vmem:[#allocation15_spill] sm:$0xff]  ;;  %v3598_v44 = vld [vmem:[#allocation18_spill] sm:$0xff] }
 0x14b   : > { %2087 = vmatpush1.bf16.msra.mxu0 %v3590_v53  ;;  %2119 = vmatpush1.bf16.msra.mxu1 %v3084_v56 }
 0x14c   : > { %2089 = vmatprep.subr.bf16.mxu0 %v3591_v60  ;;  %2121 = vmatprep.subr.bf16.mxu1 %v3093_v16 }
 0x14f   : > { %2091 = vmatpush1.bf16.msra.mxu0 %v3087_v35  ;;  %2123 = vmatpush1.bf16.msra.mxu1 %v3114_v42 }
 0x150   : > { %2093 = vmatprep.subr.bf16.mxu0 %v3102_v8  ;;  %2125 = vmatprep.subr.bf16.mxu1 %v3120_v51 }
 0x152   : > { %v2415_v12 = vpop.eup %2414 }
 0x153   : > { %v738_v54 = vmul.f32 %v2415_v12, %v733_v63  ;;  %2095 = vmatpush1.bf16.msra.mxu0 %v3117_v47  ;;  %2127 = vmatpush1.bf16.msra.mxu1 %v3130_v6  ;;  %v3601_v63 = vld [vmem:[#allocation23_spill] sm:$0xff]  ;;  %v3602_v12 = vld [vmem:[#allocation22_spill] sm:$0xff] }
 0x154   : > { %2129 = vmatprep.subr.bf16.mxu0 %v2554_v4  ;;  %2161 = vmatprep.subr.bf16.mxu1 %v2593_v19 }
 0x155   : > { %v3244_v0 = vsel %vm740_vm1, %v738_v54, %v3136_v7  ;;  %v3592_v7 = vld [vmem:[#allocation12_spill] sm:$0xff]  ;;  %v3603_v54 = vld [vmem:[#allocation25_spill] sm:$0xff] }
 0x156   : > { %992 = vmatmul.mubr.f32.vlgmr.msra.gmra.mrb[6].mxu0 %v3244_v0  ;;  %1063 = vmatmul.mubr.f32.vlgmr.msra.gmra.mrb[6].mxu1 %v3244_v0 }
 0x157   : > { %2131 = vmatpush1.bf16.msra.mxu0 %v2567_v9  ;;  %2163 = vmatpush1.bf16.msra.mxu1 %v2595_v20 }
 0x158   : > { %2133 = vmatprep.subr.bf16.mxu0 %v2569_v10  ;;  %2165 = vmatprep.subr.bf16.mxu1 %v2619_v28 }
 0x159   : > { %1168 = vmatprep.mubr.f32.mxu0 %v3581_v61  ;;  %1239 = vmatprep.mubr.f32.mxu1 %v3581_v61 }
 0x15b   : > { %2135 = vmatpush1.bf16.msra.mxu0 %v2591_v18  ;;  %2167 = vmatpush1.bf16.msra.mxu1 %v2631_v32 }
 0x15c   : > { %2137 = vmatprep.subr.bf16.mxu0 %v2607_v24  ;;  %2169 = vmatprep.subr.bf16.mxu1 %v2658_v41 }
 0x15f   : > { %2139 = vmatpush1.bf16.msra.mxu0 %v2637_v34  ;;  %2171 = vmatpush1.bf16.msra.mxu1 %v2673_v46 }
 0x160   : > { %2141 = vmatprep.subr.bf16.mxu0 %v2650_v38  ;;  %2173 = vmatprep.subr.bf16.mxu1 %v2685_v50 }
 0x163   : > { %2143 = vmatpush1.bf16.msra.mxu0 %v2679_v48  ;;  %2175 = vmatpush1.bf16.msra.mxu1 %v2712_v59 }
 0x164   : > { %2145 = vmatprep.subr.bf16.mxu0 %v3592_v7  ;;  %2177 = vmatprep.subr.bf16.mxu1 %v3593_v5  ;;  %v3607_v5 = vld [vmem:[#allocation29_spill] sm:$0xff] }
 0x165   : > { %v1858_v7 = vld [vmem:[%s2532_s27 + $0x18] sm:$0xff] }
 0x166   : > { %v751_v46 = vunpack.c.h.bf16 %v1858_v7 }
 0x167   : > { %2147 = vmatpush1.bf16.msra.mxu0 %v3594_v23  ;;  %2179 = vmatpush1.bf16.msra.mxu1 %v3595_v40  ;;  %v3604_v23 = vld [vmem:[#allocation24_spill] sm:$0xff]  ;;  %v3605_v40 = vld [vmem:[#allocation27_spill] sm:$0xff] }
 0x168   : > { %2149 = vmatprep.subr.bf16.mxu0 %v3596_v30  ;;  %2181 = vmatprep.subr.bf16.mxu1 %v3597_v29  ;;  %v3606_v30 = vld [vmem:[#allocation26_spill] sm:$0xff]  ;;  %v3608_v29 = vld [vmem:[#allocation28_spill] sm:$0xff] }
 0x16b   : > { %2151 = vmatpush1.bf16.msra.mxu0 %v3598_v44  ;;  %2183 = vmatpush1.bf16.msra.mxu1 %v3599_v49  ;;  %v3609_v44 = vld [vmem:[#allocation30_spill] sm:$0xff]  ;;  %v1857_v49 = vld [vmem:[%s2532_s27 + $0x10] sm:$0xff] }
 0x16c   : > { %2153 = vmatprep.subr.bf16.mxu0 %v3600_v62  ;;  %2185 = vmatprep.subr.bf16.mxu1 %v3601_v63  ;;  %v748_v62 = vunpack.c.l.bf16 %v1857_v49  ;;  %v749_v63 = vunpack.c.h.bf16 %v1857_v49 }
 0x16f   : > { %2155 = vmatpush1.bf16.msra.mxu0 %v3602_v12  ;;  %2187 = vmatpush1.bf16.msra.mxu1 %v3603_v54  ;;  %v750_v54 = vunpack.c.l.bf16 %v1858_v7 }
 0x170   : > { %2157 = vmatprep.subr.bf16.mxu0 %v3604_v23  ;;  %2189 = vmatprep.subr.bf16.mxu1 %v3605_v40 }
 0x173   : > { %2159 = vmatpush1.bf16.msra.mxu0 %v3606_v30  ;;  %2191 = vmatpush1.bf16.msra.mxu1 %v3607_v5 }
 0x174   : > { %2193 = vmatprep.subr.bf16.mxu0 %v3608_v29  ;;  %2225 = vmatprep.subr.bf16.mxu1 %v3609_v44 }
 0x209   : > { %v818_v59 = vpop.f32.mrb[4].mxu0  ;;  %v889_v12 = vpop.f32.mrb[4].mxu1 }
 0x20a   : > { %v894_v48 = vadd.f32 %v818_v59, %v748_v62  ;;  %v820_v50 = vpop.f32.mrb[5].mxu0  ;;  %v891_v23 = vpop.f32.mrb[5].mxu1  ;;  %v896_v5 = vadd.f32 %v889_v12, %v750_v54 }
 0x20b   : > { %v895_v38 = vadd.f32 %v820_v50, %v749_v63  ;;  %v897_v44 = vadd.f32 %v891_v23, %v751_v46 }
 0x20c   : > { %v898_v40 = vmul.f32 0.5, %v894_v48 }
 0x20d   : > { %v902_v30 = vmul.f32 0.5, %v895_v38  ;;  %v907_v29 = vmul.f32 0.5, %v897_v44 }
 0x20e   : > { %2416 = vtanh.f32 %v898_v40  ;;  %v916_v40 = vstv %s743_s24 }
 0x20f   : > { %2418 = vtanh.f32 %v902_v30  ;;  %vm917_vm2 = vcmp.gt.s32.totalorder %v3180_v27, %v916_v40  ;;  %v1860_v30 = vld [vmem:[%s2537_s6 + $0x28] sm:$0xff] }
 0x210   : > { %2420 = vtanh.f32 %v896_v5  ;;  %v925_v12 = vunpack.c.l.bf16 %v1860_v30 }
 0x211   : > { %2422 = vtanh.f32 %v907_v29 }
 0x218   : > { %v2417_v34 = vpop.eup %2416 }
 0x219   : > { %v2419_v49 = vpop.eup %2418  ;;  %v900_v41 = vadd.f32 1.0, %v2417_v34  ;;  %v1859_v34 = vld [vmem:[%s2537_s6 + $0x20] sm:$0xff] }
 0x21a   : > { %v904_v24 = vadd.f32 1.0, %v2419_v49  ;;  %v2421_v50 = vpop.eup %2420  ;;  %v923_v23 = vunpack.c.l.bf16 %v1859_v34  ;;  %v924_v29 = vunpack.c.h.bf16 %v1859_v34 }
 0x21b   : > { %v901_v59 = vmul.f32 0.5, %v900_v41  ;;  %v2423_v5 = vpop.eup %2422 }
 0x21c   : > { %v905_v62 = vmul.f32 0.5, %v904_v24  ;;  %v909_v41 = vadd.f32 1.0, %v2423_v5 }
 0x21d   : > { %v912_v48 = vmul.f32 %v2421_v50, %v901_v59 }
 0x21e   : > { %v911_v38 = vmul.f32 %v905_v62, %v3190_v1  ;;  %v910_v59 = vmul.f32 0.5, %v909_v41 }
 0x220   : > { %v913_v7 = vadd.f32 %v912_v48, %v911_v38 }
 0x222   : > { %2424 = vtanh.f32 %v913_v7  ;;  %v3290_v46 = vsel %vm917_vm2, %v913_v7, %v3190_v1  ;;  %v926_v7 = vunpack.c.h.bf16 %v1860_v30 }
 0x229   : > { %v993_v24 = vpop.f32.mrb[6].mxu0  ;;  %v1064_v44 = vpop.f32.mrb[6].mxu1 }
 0x22a   : > { %v1069_v63 = vadd.f32 %v993_v24, %v923_v23  ;;  %v995_v54 = vpop.f32.mrb[7].mxu0  ;;  %v1066_v49 = vpop.f32.mrb[7].mxu1  ;;  %v1071_v1 = vadd.f32 %v1064_v44, %v925_v12  ;;  %v1091_v12 = vstv %s744_s25 }
 0x22b   : > { %v1070_v50 = vadd.f32 %v995_v54, %v924_v29  ;;  %v1072_v5 = vadd.f32 %v1066_v49, %v926_v7  ;;  %vm1092_vm3 = vcmp.gt.s32.totalorder %v3180_v27, %v1091_v12  ;;  %v3618_v7 = vld [vmem:[#allocation13_spill] sm:$0xff]  ;;  %v3631_v12 = vld [vmem:[#allocation24_spill] sm:$0xff] }
 0x22c   : > { %v2425_v62 = vpop.eup %2424  ;;  %v1073_v48 = vmul.f32 0.5, %v1069_v63 }
 0x22d   : > { %v915_v38 = vmul.f32 %v2425_v62, %v910_v59  ;;  %v1077_v32 = vmul.f32 0.5, %v1070_v50 }
 0x22e   : > { %2426 = vtanh.f32 %v1073_v48 }
 0x22f   : > { %2428 = vtanh.f32 %v1077_v32  ;;  %v3297_v34 = vsel %vm917_vm2, %v915_v38, %v3197_v14  ;;  %v1082_v32 = vmul.f32 0.5, %v1072_v5  ;;  %v3619_v5 = vld [vmem:[#allocation12_spill] sm:$0xff] }
 0x230   : > { %1169 = vmatmul.mubr.f32.vlgmr.msra.gmra.mrb[8].mxu0 %v3297_v34  ;;  %1240 = vmatmul.mubr.f32.vlgmr.msra.gmra.mrb[8].mxu1 %v3297_v34  ;;  %2430 = vtanh.f32 %v1071_v1  ;;  %v3613_v1 = vld [vmem:[#allocation6_spill] sm:$0xff] }
 0x231   : > { %2195 = vmatpush1.bf16.msra.mxu0 %v2864_v2  ;;  %2227 = vmatpush1.bf16.msra.mxu1 %v2898_v25  ;;  %2432 = vtanh.f32 %v1082_v32  ;;  %v3621_v32 = vld [vmem:[#allocation14_spill] sm:$0xff] }
 0x232   : > { %2197 = vmatprep.subr.bf16.mxu0 %v2879_v13  ;;  %2229 = vmatprep.subr.bf16.mxu1 %v2907_v33 }
 0x233   : > { %1343 = vmatprep.mubr.f32.mxu0 %v3581_v61  ;;  %1414 = vmatprep.mubr.f32.mxu1 %v3581_v61 }
 0x235   : > { %2199 = vmatpush1.bf16.msra.mxu0 %v2901_v26  ;;  %2231 = vmatpush1.bf16.msra.mxu1 %v2936_v52 }
 0x236   : > { %2201 = vmatprep.subr.bf16.mxu0 %v2916_v39  ;;  %2233 = vmatprep.subr.bf16.mxu1 %v2946_v57 }
 0x238   : > { %v2427_v14 = vpop.eup %2426 }
 0x239   : > { %v2429_v40 = vpop.eup %2428  ;;  %v1075_v23 = vadd.f32 1.0, %v2427_v14  ;;  %2203 = vmatpush1.bf16.msra.mxu0 %v2940_v55  ;;  %2235 = vmatpush1.bf16.msra.mxu1 %v2973_v22  ;;  %v3622_v14 = vld [vmem:[#allocation17_spill] sm:$0xff] }
 0x23a   : > { %v1079_v41 = vadd.f32 1.0, %v2429_v40  ;;  %2205 = vmatprep.subr.bf16.mxu0 %v2955_v3  ;;  %2237 = vmatprep.subr.bf16.mxu1 %v2985_v37  ;;  %v2431_v29 = vpop.eup %2430  ;;  %v3623_v40 = vld [vmem:[#allocation16_spill] sm:$0xff] }
 0x23b   : > { %v1076_v30 = vmul.f32 0.5, %v1075_v23  ;;  %v2433_v59 = vpop.eup %2432  ;;  %v3624_v23 = vld [vmem:[#allocation19_spill] sm:$0xff] }
 0x23c   : > { %v1080_v24 = vmul.f32 0.5, %v1079_v41  ;;  %v1084_v50 = vadd.f32 1.0, %v2433_v59  ;;  %v3625_v41 = vld [vmem:[#allocation18_spill] sm:$0xff] }
 0x23d   : > { %v1087_v44 = vmul.f32 %v2431_v29, %v1076_v30  ;;  %2207 = vmatpush1.bf16.msra.mxu0 %v3584_v11  ;;  %2239 = vmatpush1.bf16.msra.mxu1 %v3585_v15  ;;  %v3626_v30 = vld [vmem:[#allocation21_spill] sm:$0xff]  ;;  %v3627_v29 = vld [vmem:[#allocation20_spill] sm:$0xff]  ;;  %v3633_v59 = vld [vmem:[#allocation26_spill] sm:$0xff] }
 0x23e   : > { %v1086_v63 = vmul.f32 %v1080_v24, %v3227_v45  ;;  %2209 = vmatprep.subr.bf16.mxu0 %v3586_v31  ;;  %2241 = vmatprep.subr.bf16.mxu1 %v3587_v17  ;;  %v3628_v24 = vld [vmem:[#allocation23_spill] sm:$0xff] }
 0x240   : > { %v1088_v54 = vadd.f32 %v1087_v44, %v1086_v63  ;;  %v3629_v44 = vld [vmem:[#allocation22_spill] sm:$0xff]  ;;  %v3630_v63 = vld [vmem:[#allocation25_spill] sm:$0xff] }
 0x241   : > { %2211 = vmatpush1.bf16.msra.mxu0 %v3588_v21  ;;  %2243 = vmatpush1.bf16.msra.mxu1 %v3048_v58 }
 0x242   : > { %2434 = vtanh.f32 %v1088_v54  ;;  %2213 = vmatprep.subr.bf16.mxu0 %v3589_v36  ;;  %2245 = vmatprep.subr.bf16.mxu1 %v3057_v43  ;;  %v3329_v49 = vsel %vm1092_vm3, %v1088_v54, %v3227_v45  ;;  %v1085_v45 = vmul.f32 0.5, %v1084_v50  ;;  %v3632_v54 = vld [vmem:[#allocation27_spill] sm:$0xff]  ;;  %v3634_v50 = vld [vmem:[#allocation29_spill] sm:$0xff] }
 0x245   : > { %2215 = vmatpush1.bf16.msra.mxu0 %v3590_v53  ;;  %2247 = vmatpush1.bf16.msra.mxu1 %v3084_v56 }
 0x246   : > { %2217 = vmatprep.subr.bf16.mxu0 %v3591_v60  ;;  %2249 = vmatprep.subr.bf16.mxu1 %v3093_v16 }
 0x249   : > { %2219 = vmatpush1.bf16.msra.mxu0 %v3087_v35  ;;  %2251 = vmatpush1.bf16.msra.mxu1 %v3114_v42 }
 0x24a   : > { %2221 = vmatprep.subr.bf16.mxu0 %v3102_v8  ;;  %2253 = vmatprep.subr.bf16.mxu1 %v3120_v51 }
 0x24c   : > { %v2435_v62 = vpop.eup %2434 }
 0x24d   : > { %v1090_v48 = vmul.f32 %v2435_v62, %v1085_v45  ;;  %2223 = vmatpush1.bf16.msra.mxu0 %v3117_v47  ;;  %2255 = vmatpush1.bf16.msra.mxu1 %v3130_v6  ;;  %v3635_v45 = vld [vmem:[#allocation28_spill] sm:$0xff]  ;;  %v3636_v62 = vld [vmem:[#allocation30_spill] sm:$0xff] }
 0x24e   : > { %2257 = vmatprep.subr.bf16.mxu0 %v2554_v4  ;;  %2289 = vmatprep.subr.bf16.mxu1 %v2593_v19  ;;  %v3610_v4 = vld [vmem:[#allocation5_spill] sm:$0xff]  ;;  %v3611_v19 = vld [vmem:[#allocation4_spill] sm:$0xff] }
 0x24f   : > { %v3346_v38 = vsel %vm1092_vm3, %v1090_v48, %v3244_v0  ;;  %v3612_v0 = vld [vmem:[#allocation8_spill] sm:$0xff]  ;;  %v1861_v48 = vld [vmem:[%s2532_s27 + $0x20] sm:$0xff] }
 0x250   : > { %1344 = vmatmul.mubr.f32.vlgmr.msra.gmra.mrb[10].mxu0 %v3346_v38  ;;  %1415 = vmatmul.mubr.f32.vlgmr.msra.gmra.mrb[10].mxu1 %v3346_v38 }
 0x251   : > { %2259 = vmatpush1.bf16.msra.mxu0 %v2567_v9  ;;  %2291 = vmatpush1.bf16.msra.mxu1 %v2595_v20  ;;  %v3614_v9 = vld [vmem:[#allocation9_spill] sm:$0xff]  ;;  %v3615_v20 = vld [vmem:[#allocation7_spill] sm:$0xff] }
 0x252   : > { %2261 = vmatprep.subr.bf16.mxu0 %v2569_v10  ;;  %2293 = vmatprep.subr.bf16.mxu1 %v2619_v28  ;;  %v3616_v10 = vld [vmem:[#allocation11_spill] sm:$0xff]  ;;  %v3617_v28 = vld [vmem:[#allocation10_spill] sm:$0xff] }
 0x253   : > { %1520 = vmatprep.mubr.f32.mxu0 %v3581_v61  ;;  %1591 = vmatprep.mubr.f32.mxu1 %v3581_v61 }
 0x255   : > { %2263 = vmatpush1.bf16.msra.mxu0 %v2591_v18  ;;  %2295 = vmatpush1.bf16.msra.mxu1 %v3610_v4  ;;  %v3620_v18 = vld [vmem:[#allocation15_spill] sm:$0xff]  ;;  %v1100_v4 = vunpack.c.l.bf16 %v1861_v48 }
 0x256   : > { %2265 = vmatprep.subr.bf16.mxu0 %v3611_v19  ;;  %2297 = vmatprep.subr.bf16.mxu1 %v3612_v0  ;;  %v1862_v19 = vld [vmem:[%s2532_s27 + $0x28] sm:$0xff]  ;;  %v1101_v0 = vunpack.c.h.bf16 %v1861_v48 }
 0x259   : > { %2267 = vmatpush1.bf16.msra.mxu0 %v3613_v1  ;;  %2299 = vmatpush1.bf16.msra.mxu1 %v3614_v9 }
 0x25a   : > { %2269 = vmatprep.subr.bf16.mxu0 %v3615_v20  ;;  %2301 = vmatprep.subr.bf16.mxu1 %v3616_v10  ;;  %v1102_v10 = vunpack.c.l.bf16 %v1862_v19 }
 0x25d   : > { %2271 = vmatpush1.bf16.msra.mxu0 %v3617_v28  ;;  %2303 = vmatpush1.bf16.msra.mxu1 %v3618_v7 }
 0x25e   : > { %2273 = vmatprep.subr.bf16.mxu0 %v3619_v5  ;;  %2305 = vmatprep.subr.bf16.mxu1 %v3620_v18 }
 0x261   : > { %2275 = vmatpush1.bf16.msra.mxu0 %v3621_v32  ;;  %2307 = vmatpush1.bf16.msra.mxu1 %v3622_v14 }
 0x262   : > { %2277 = vmatprep.subr.bf16.mxu0 %v3623_v40  ;;  %2309 = vmatprep.subr.bf16.mxu1 %v3624_v23  ;;  %v1103_v40 = vunpack.c.h.bf16 %v1862_v19 }
 0x265   : > { %2279 = vmatpush1.bf16.msra.mxu0 %v3625_v41  ;;  %2311 = vmatpush1.bf16.msra.mxu1 %v3626_v30 }
 0x266   : > { %2281 = vmatprep.subr.bf16.mxu0 %v3627_v29  ;;  %2313 = vmatprep.subr.bf16.mxu1 %v3628_v24 }
 0x269   : > { %2283 = vmatpush1.bf16.msra.mxu0 %v3629_v44  ;;  %2315 = vmatpush1.bf16.msra.mxu1 %v3630_v63 }
 0x26a   : > { %2285 = vmatprep.subr.bf16.mxu0 %v3631_v12  ;;  %2317 = vmatprep.subr.bf16.mxu1 %v3632_v54 }
 0x26d   : > { %2287 = vmatpush1.bf16.msra.mxu0 %v3633_v59  ;;  %2319 = vmatpush1.bf16.msra.mxu1 %v3634_v50 }
 0x26e   : > { %2321 = vmatprep.subr.bf16.mxu0 %v3635_v45  ;;  %2353 = vmatprep.subr.bf16.mxu1 %v3636_v62  ;;  %v1268_v45 = vstv %s1095_s26 }
 0x26f   : > { %vm1269_vm4 = vcmp.gt.s32.totalorder %v3180_v27, %v1268_v45 }
 0x303   : > { %v1170_v1 = vpop.f32.mrb[8].mxu0  ;;  %v1241_v9 = vpop.f32.mrb[8].mxu1 }
 0x304   : > { %v1246_v20 = vadd.f32 %v1170_v1, %v1100_v4  ;;  %v1172_v28 = vpop.f32.mrb[9].mxu0  ;;  %v1243_v7 = vpop.f32.mrb[9].mxu1  ;;  %v1248_v14 = vadd.f32 %v1241_v9, %v1102_v10  ;;  %v1863_v4 = vld [vmem:[%s2537_s6 + $0x10] sm:$0xff]  ;;  %v1864_v9 = vld [vmem:[%s2537_s6 + $0x18] sm:$0xff] }
 0x305   : > { %v1247_v5 = vadd.f32 %v1172_v28, %v1101_v0  ;;  %v1249_v23 = vadd.f32 %v1243_v7, %v1103_v40  ;;  %v1275_v0 = vunpack.c.l.bf16 %v1863_v4 }
 0x306   : > { %v1250_v18 = vmul.f32 0.5, %v1246_v20  ;;  %v1276_v20 = vunpack.c.h.bf16 %v1863_v4 }
 0x307   : > { %v1254_v32 = vmul.f32 0.5, %v1247_v5  ;;  %v1259_v41 = vmul.f32 0.5, %v1249_v23  ;;  %v1277_v5 = vunpack.c.l.bf16 %v1864_v9 }
 0x308   : > { %2436 = vtanh.f32 %v1250_v18 }
 0x309   : > { %2438 = vtanh.f32 %v1254_v32 }
 0x30a   : > { %2440 = vtanh.f32 %v1248_v14 }
 0x30b   : > { %2442 = vtanh.f32 %v1259_v41 }
 0x312   : > { %v2437_v30 = vpop.eup %2436 }
 0x313   : > { %v2439_v29 = vpop.eup %2438  ;;  %v1252_v24 = vadd.f32 1.0, %v2437_v30 }
 0x314   : > { %v1256_v44 = vadd.f32 1.0, %v2439_v29  ;;  %v2441_v12 = vpop.eup %2440 }
 0x315   : > { %v1253_v63 = vmul.f32 0.5, %v1252_v24  ;;  %v2443_v19 = vpop.eup %2442  ;;  %v1278_v24 = vunpack.c.h.bf16 %v1864_v9 }
 0x316   : > { %v1257_v54 = vmul.f32 0.5, %v1256_v44  ;;  %v1261_v1 = vadd.f32 1.0, %v2443_v19 }
 0x317   : > { %v1264_v59 = vmul.f32 %v2441_v12, %v1253_v63 }
 0x318   : > { %v1263_v50 = vmul.f32 %v1257_v54, %v3290_v46  ;;  %v1262_v14 = vmul.f32 0.5, %v1261_v1 }
 0x31a   : > { %v1265_v62 = vadd.f32 %v1264_v59, %v1263_v50 }
 0x31c   : > { %2444 = vtanh.f32 %v1265_v62  ;;  %v3392_v48 = vsel %vm1269_vm4, %v1265_v62, %v3290_v46 }
 0x323   : > { %v1345_v10 = vpop.f32.mrb[10].mxu0  ;;  %v1416_v28 = vpop.f32.mrb[10].mxu1 }
 0x324   : > { %v1421_v7 = vadd.f32 %v1345_v10, %v1275_v0  ;;  %v1347_v18 = vpop.f32.mrb[11].mxu0  ;;  %v1418_v32 = vpop.f32.mrb[11].mxu1  ;;  %v1423_v46 = vadd.f32 %v1416_v28, %v1277_v5 }
 0x325   : > { %v1422_v40 = vadd.f32 %v1347_v18, %v1276_v20  ;;  %v1424_v63 = vadd.f32 %v1418_v32, %v1278_v24 }
 0x326   : > { %v2445_v23 = vpop.eup %2444  ;;  %v1425_v41 = vmul.f32 0.5, %v1421_v7  ;;  %v1624_v7 = vld [vmem:[%s2537_s6] sm:$0xff] }
 0x327   : > { %v1267_v30 = vmul.f32 %v2445_v23, %v1262_v14  ;;  %v1429_v29 = vmul.f32 0.5, %v1422_v40  ;;  %v1626_v18 = vunpack.c.l.bf16 %v1624_v7  ;;  %v1625_v14 = vld [vmem:[%s2537_s6 + $0x8] sm:$0xff]  ;;  %v1627_v40 = vunpack.c.h.bf16 %v1624_v7 }
 0x328   : > { %2446 = vtanh.f32 %v1425_v41 }
 0x329   : > { %2448 = vtanh.f32 %v1429_v29  ;;  %v3399_v44 = vsel %vm1269_vm4, %v1267_v30, %v3297_v34  ;;  %v1434_v34 = vmul.f32 0.5, %v1424_v63  ;;  %v1628_v29 = vunpack.c.l.bf16 %v1625_v14 }
 0x32a   : > { %1521 = vmatmul.mubr.f32.vlgmr.msra.gmra.mrb[12].mxu0 %v3399_v44  ;;  %1592 = vmatmul.mubr.f32.vlgmr.msra.gmra.mrb[12].mxu1 %v3399_v44  ;;  %2450 = vtanh.f32 %v1423_v46 }
 0x32b   : > { %2323 = vmatpush1.bf16.msra.mxu0 %v2864_v2  ;;  %2355 = vmatpush1.bf16.msra.mxu1 %v2898_v25  ;;  %2452 = vtanh.f32 %v1434_v34 }
 0x32c   : > { %2325 = vmatprep.subr.bf16.mxu0 %v2879_v13  ;;  %2357 = vmatprep.subr.bf16.mxu1 %v2907_v33 }
 0x32d   : > { %1694 = vmatprep.mubr.f32.mxu0 %v3581_v61  ;;  %1765 = vmatprep.mubr.f32.mxu1 %v3581_v61 }
 0x32f   : > { %2327 = vmatpush1.bf16.msra.mxu0 %v2901_v26  ;;  %2359 = vmatpush1.bf16.msra.mxu1 %v2936_v52 }
 0x330   : > { %2329 = vmatprep.subr.bf16.mxu0 %v2916_v39  ;;  %2361 = vmatprep.subr.bf16.mxu1 %v2946_v57 }
 0x332   : > { %v2447_v2 = vpop.eup %2446 }
 0x333   : > { %v2449_v25 = vpop.eup %2448  ;;  %v1427_v12 = vadd.f32 1.0, %v2447_v2  ;;  %2331 = vmatpush1.bf16.msra.mxu0 %v2940_v55  ;;  %2363 = vmatpush1.bf16.msra.mxu1 %v2973_v22  ;;  %v1443_v55 = vstv %s1096_s28 }
 0x334   : > { %v1431_v13 = vadd.f32 1.0, %v2449_v25  ;;  %2333 = vmatprep.subr.bf16.mxu0 %v2955_v3  ;;  %2365 = vmatprep.subr.bf16.mxu1 %v2985_v37  ;;  %v2451_v33 = vpop.eup %2450  ;;  %vm1444_vm5 = vcmp.gt.s32.totalorder %v3180_v27, %v1443_v55 }
 0x335   : > { %v1428_v26 = vmul.f32 0.5, %v1427_v12  ;;  %v2453_v37 = vpop.eup %2452 }
 0x336   : > { %v1432_v52 = vmul.f32 0.5, %v1431_v13 }
 0x337   : > { %v1439_v39 = vmul.f32 %v2451_v33, %v1428_v26  ;;  %2335 = vmatpush1.bf16.msra.mxu0 %v3584_v11  ;;  %2367 = vmatpush1.bf16.msra.mxu1 %v3585_v15  ;;  %v1629_v26 = vunpack.c.h.bf16 %v1625_v14 }
 0x338   : > { %v1438_v57 = vmul.f32 %v1432_v52, %v3329_v49  ;;  %2337 = vmatprep.subr.bf16.mxu0 %v3586_v31  ;;  %2369 = vmatprep.subr.bf16.mxu1 %v3587_v17 }
 0x33a   : > { %v1440_v22 = vadd.f32 %v1439_v39, %v1438_v57 }
 0x33b   : > { %2339 = vmatpush1.bf16.msra.mxu0 %v3588_v21  ;;  %2371 = vmatpush1.bf16.msra.mxu1 %v3048_v58  ;;  %v1436_v58 = vadd.f32 1.0, %v2453_v37 }
 0x33c   : > { %2454 = vtanh.f32 %v1440_v22  ;;  %2341 = vmatprep.subr.bf16.mxu0 %v3589_v36  ;;  %2373 = vmatprep.subr.bf16.mxu1 %v3057_v43  ;;  %v3431_v3 = vsel %vm1444_vm5, %v1440_v22, %v3329_v49 }
 0x33d   : > { %v1437_v43 = vmul.f32 0.5, %v1436_v58 }
 0x33f   : > { %2343 = vmatpush1.bf16.msra.mxu0 %v3590_v53  ;;  %2375 = vmatpush1.bf16.msra.mxu1 %v3084_v56 }
 0x340   : > { %2345 = vmatprep.subr.bf16.mxu0 %v3591_v60  ;;  %2377 = vmatprep.subr.bf16.mxu1 %v3093_v16 }
 0x343   : > { %2347 = vmatpush1.bf16.msra.mxu0 %v3087_v35  ;;  %2379 = vmatpush1.bf16.msra.mxu1 %v3114_v42  ;;  %v1865_v35 = vld [vmem:[%s2532_s27 + $0x30] sm:$0xff] }
 0x344   : > { %2349 = vmatprep.subr.bf16.mxu0 %v3102_v8  ;;  %2381 = vmatprep.subr.bf16.mxu1 %v3120_v51  ;;  %v1452_v56 = vunpack.c.l.bf16 %v1865_v35  ;;  %v1866_v8 = vld [vmem:[%s2532_s27 + $0x38] sm:$0xff]  ;;  %v1453_v42 = vunpack.c.h.bf16 %v1865_v35  ;;  %s1447_s27 = sadd.s32 3, %s2525_s20  ;;  %v1794_v35 = vstv %s1448_s30 }
 0x345   : > { %v1454_v17 = vunpack.c.l.bf16 %v1866_v8  ;;  %v1455_v49 = vunpack.c.h.bf16 %v1866_v8  ;;  %v1620_v20 = vstv %s1447_s27  ;;  %vm1795_vm7 = vcmp.gt.s32.totalorder %v3180_v27, %v1794_v35 }
 0x346   : > { %v2455_v61 = vpop.eup %2454  ;;  %vm1621_vm6 = vcmp.gt.s32.totalorder %v3180_v27, %v1620_v20 }
 0x347   : > { %v1442_v11 = vmul.f32 %v2455_v61, %v1437_v43  ;;  %2351 = vmatpush1.bf16.msra.mxu0 %v3117_v47  ;;  %2383 = vmatpush1.bf16.msra.mxu1 %v3130_v6 }
 0x349   : > { %v3446_v16 = vsel %vm1444_vm5, %v1442_v11, %v3346_v38 }
 0x34a   : > { %1695 = vmatmul.mubr.f32.vlgmr.msra.gmra.mrb[14].mxu0 %v3446_v16  ;;  %1766 = vmatmul.mubr.f32.vlgmr.msra.gmra.mrb[14].mxu1 %v3446_v16 }
 0x3fd   : > { %v1522_v51 = vpop.f32.mrb[12].mxu0  ;;  %v1593_v15 = vpop.f32.mrb[12].mxu1 }
 0x3fe   : > { %v1598_v31 = vadd.f32 %v1522_v51, %v1452_v56  ;;  %v1524_v47 = vpop.f32.mrb[13].mxu0  ;;  %v1595_v21 = vpop.f32.mrb[13].mxu1  ;;  %v1600_v60 = vadd.f32 %v1593_v15, %v1454_v17 }
 0x3ff   : > { %v1599_v6 = vadd.f32 %v1524_v47, %v1453_v42  ;;  %v1601_v38 = vadd.f32 %v1595_v21, %v1455_v49 }
 0x400   : > { %v1602_v36 = vmul.f32 0.5, %v1598_v31 }
 0x401   : > { %v1606_v53 = vmul.f32 0.5, %v1599_v6  ;;  %v1611_v54 = vmul.f32 0.5, %v1601_v38 }
 0x402   : > { %2456 = vtanh.f32 %v1602_v36 }
 0x403   : > { %2458 = vtanh.f32 %v1606_v53 }
 0x404   : > { %2460 = vtanh.f32 %v1600_v60 }
 0x405   : > { %2462 = vtanh.f32 %v1611_v54 }
 0x40c   : > { %v2457_v59 = vpop.eup %2456 }
 0x40d   : > { %v2459_v50 = vpop.eup %2458  ;;  %v1604_v45 = vadd.f32 1.0, %v2457_v59 }
 0x40e   : > { %v1608_v62 = vadd.f32 1.0, %v2459_v50  ;;  %v2461_v19 = vpop.eup %2460 }
 0x40f   : > { %v1605_v4 = vmul.f32 0.5, %v1604_v45  ;;  %v2463_v5 = vpop.eup %2462 }
 0x410   : > { %v1609_v0 = vmul.f32 0.5, %v1608_v62  ;;  %v1613_v32 = vadd.f32 1.0, %v2463_v5 }
 0x411   : > { %v1616_v1 = vmul.f32 %v2461_v19, %v1605_v4 }
 0x412   : > { %v1615_v9 = vmul.f32 %v1609_v0, %v3392_v48  ;;  %v1614_v63 = vmul.f32 0.5, %v1613_v32 }
 0x414   : > { %v1617_v10 = vadd.f32 %v1616_v1, %v1615_v9 }
 0x416   : > { %2464 = vtanh.f32 %v1617_v10  ;;  %v1623_v28 = vsel %vm1621_vm6, %v1617_v10, %v3392_v48 }
 0x417   : > { %1799 = vst [vmem:[#allocation2] sm:$0xff] %v1623_v28 }
 0x41d   : > { %v1696_v23 = vpop.f32.mrb[14].mxu0  ;;  %v1767_v41 = vpop.f32.mrb[14].mxu1 }
 0x41e   : > { %v1772_v30 = vadd.f32 %v1696_v23, %v1626_v18  ;;  %v1698_v46 = vpop.f32.mrb[15].mxu0  ;;  %v1769_v24 = vpop.f32.mrb[15].mxu1  ;;  %v1774_v48 = vadd.f32 %v1767_v41, %v1628_v29 }
 0x41f   : > { %v1773_v34 = vadd.f32 %v1698_v46, %v1627_v40  ;;  %v1775_v52 = vadd.f32 %v1769_v24, %v1629_v26 }
 0x420   : > { %v2465_v2 = vpop.eup %2464  ;;  %v1776_v25 = vmul.f32 0.5, %v1772_v30 }
 0x421   : > { %v1619_v12 = vmul.f32 %v2465_v2, %v1614_v63  ;;  %v1780_v13 = vmul.f32 0.5, %v1773_v34  ;;  %v1785_v39 = vmul.f32 0.5, %v1775_v52 }
 0x422   : > { %2466 = vtanh.f32 %v1776_v25 }
 0x423   : > { %v1622_v33 = vsel %vm1621_vm6, %v1619_v12, %v3399_v44  ;;  %2468 = vtanh.f32 %v1780_v13 }
 0x424   : > { %1798 = vst [vmem:[%s3482_s5] sm:$0xff] %v1622_v33  ;;  %2470 = vtanh.f32 %v1774_v48 }
 0x425   : > { %2472 = vtanh.f32 %v1785_v39 }
 0x42c   : > { %v2467_v57 = vpop.eup %2466 }
 0x42d   : > { %v2469_v55 = vpop.eup %2468  ;;  %v1778_v22 = vadd.f32 1.0, %v2467_v57 }
 0x42e   : > { %v1782_v37 = vadd.f32 1.0, %v2469_v55  ;;  %v2471_v43 = vpop.eup %2470 }
 0x42f   : > { %v1779_v58 = vmul.f32 0.5, %v1778_v22  ;;  %v2473_v42 = vpop.eup %2472 }
 0x430   : > { %v1783_v61 = vmul.f32 0.5, %v1782_v37  ;;  %v1787_v51 = vadd.f32 1.0, %v2473_v42 }
 0x431   : > { %v1790_v11 = vmul.f32 %v2471_v43, %v1779_v58 }
 0x432   : > { %v1789_v44 = vmul.f32 %v1783_v61, %v3431_v3  ;;  %v1788_v15 = vmul.f32 0.5, %v1787_v51 }
 0x434   : > { %v1791_v56 = vadd.f32 %v1790_v11, %v1789_v44 }
 0x436   : > { %2474 = vtanh.f32 %v1791_v56  ;;  %v1797_v8 = vsel %vm1795_vm7, %v1791_v56, %v3431_v3 }
 0x437   : > { %1801 = vst [vmem:[#allocation3] sm:$0xff] %v1797_v8 }
 0x440   : > { %v2475_v31 = vpop.eup %2474 }
 0x441   : > { %v1793_v17 = vmul.f32 %v2475_v31, %v1788_v15 }
 0x443   : > { %v1796_v47 = vsel %vm1795_vm7, %v1793_v17, %v3446_v16 }
 0x444   : > { %1867 = vst [vmem:[%s3482_s5 + $0x8] sm:$0xff] %v1796_v47 }
 0x445 PF: > { %s15_s18 = sadd.s32 1, %s2482_s18  }
 0x446   : > { %p12_p6 = scmp.ge.s32.totalorder %s15_s18, 4  }
 0x448   :  { %14 = sbr.rel (!%p12_p6) target bundleno = 1 (0x1), region = 80 }

</bundles_post_ra>
